<compile_context>
chip_gen: v5e
topology: v5e:2x2
jax: 0.10.0
libtpu: 0.0.40
codegen_flags: <defaults>
</compile_context>

<pallas_src>
import math
import jax
import jax.numpy as jnp
from jax.experimental import pallas as pl
from jax.experimental.pallas import tpu as pltpu


# ----------------------------------------------------------------------------
# Fused kernel: e_layers x LSTM recurrence + final Linear projection.
# ----------------------------------------------------------------------------
def _make_fused_kernel(e_layers, B, T):
    def kernel(*args):
        # args = x, (w_ih, w_hh, b) * e_layers, proj_w, proj_b, out, y_scratch
        x_ref = args[0]
        layer_refs = [(args[1 + 3 * l], args[2 + 3 * l], args[3 + 3 * l])
                      for l in range(e_layers)]
        pw_ref = args[1 + 3 * e_layers]
        pb_ref = args[2 + 3 * e_layers]
        o_ref = args[3 + 3 * e_layers]
        y_scr = args[4 + 3 * e_layers]          # VMEM (T*B, H): inter-layer activations

        H = layer_refs[0][1].shape[0]
        f32 = jnp.float32

        # Lane masks for the fused single-tanh gate activation, built ONCE
        # (hoisted outside both the layer loop and the time loop).
        lane = jax.lax.broadcasted_iota(jnp.int32, (B, 4 * H), 1)
        is_g = jnp.logical_and(lane >= 2 * H, lane < 3 * H)       # g lanes -> pure tanh
        act_scale = jnp.where(is_g, 1.0, 0.5).astype(f32)         # y     vs 0.5*y
        act_shift = jnp.where(is_g, 0.0, 0.5).astype(f32)         # +0    vs +0.5
        lane_r = jax.lax.broadcasted_iota(jnp.int32, (1, 4 * H), 1)
        pre_scale = jnp.where(jnp.logical_and(lane_r >= 2 * H, lane_r < 3 * H),
                              1.0, 0.5).astype(f32)               # sigmoid arg-scale

        cur2d = x_ref[...]                      # (T*B, D_in), rows = t*B + b (time-major)

        for (wih_ref, whh_ref, b_ref) in layer_refs:
            wih = wih_ref[...]                  # (D_in, 4H) -- loaded once per layer
            whh_s = whh_ref[...] * pre_scale    # (H, 4H), 0.5 folded into i/f/o columns
            bias = b_ref[...]                   # (1, 4H) == b_ih + b_hh
            # Hoisted input projection for the whole sequence: one MXU matmul,
            # with the sigmoid argument-scale folded in (off the serial path).
            gx = (jnp.dot(cur2d, wih, preferred_element_type=f32) + bias) * pre_scale

            h = jnp.zeros((B, H), f32)
            c = jnp.zeros((B, H), f32)
            # Fully-unrolled serial recurrence: per step only h @ W_hh + ONE tanh
            # sit on the critical path.
            for t in range(T):
                row = t * B
                pre = gx[row:row + B, :]                           # contiguous 2-sublane slice
                if t > 0:
                    pre = pre + jnp.dot(h, whh_s, preferred_element_type=f32)
                y = jnp.tanh(pre)                # single full-width EUP op per step
                act = y * act_scale + act_shift  # sigmoid on i/f/o lanes, tanh on g lanes
                i_g = act[:, 0 * H:1 * H]        # PyTorch gate order: i, f, g, o
                f_g = act[:, 1 * H:2 * H]
                g_g = act[:, 2 * H:3 * H]
                o_g = act[:, 3 * H:4 * H]
                c = i_g * g_g if t == 0 else f_g * c + i_g * g_g   # c0 == 0
                h = o_g * jnp.tanh(c)
                y_scr[pl.ds(row, B), :] = h      # contiguous 2-sublane store
            # Inter-layer dropout is identity at inference.
            cur2d = y_scr[...]                   # (T*B, H)

        # Output projection over all timesteps at once: one matmul + one (small) store.
        o_ref[...] = (jnp.dot(cur2d, pw_ref[...], preferred_element_type=f32)
                      + pb_ref[...])

    return kernel


def fused_lstm_forward(x_enc, lstm_params, proj_params):
    """x_enc: [B, T, enc_in] (batch_first). Returns [B, T, c_out]."""
    B, T, D = x_enc.shape
    L = len(lstm_params)
    H = lstm_params[0][1].shape[0]
    pw, pb = proj_params
    C = pw.shape[1]

    # Time-major flatten in the wrapper (rows = t*B + b): in-kernel per-step
    # slices/stores become contiguous sublane accesses.
    x_tm = jnp.transpose(x_enc.astype(jnp.float32), (1, 0, 2)).reshape(T * B, D)

    inputs = [x_tm]
    for (w_ih, w_hh, b) in lstm_params:
        inputs += [w_ih, w_hh, b]
    inputs += [pw, pb]

    # No grid: everything is tiny, so whole arrays are passed as full VMEM blocks
    # (removes the single-iteration pipeline prologue/epilogue and double-buffered copies).
    # NOTE: at larger batch, add a leading "parallel" grid axis over batch tiles to
    # engage the second TensorCore on v7x.
    vmem = pltpu.MemorySpace.VMEM
    out_tm = pl.pallas_call(
        _make_fused_kernel(L, B, T),
        out_shape=jax.ShapeDtypeStruct((T * B, C), jnp.float32),
        in_specs=[pl.BlockSpec(memory_space=vmem) for _ in inputs],
        out_specs=pl.BlockSpec(memory_space=vmem),
        scratch_shapes=[pltpu.VMEM((T * B, H), jnp.float32)],
    )(*inputs)

    # Back to batch-first (B, T, C).
    return jnp.transpose(out_tm.reshape(T, B, C), (1, 0, 2))


# ----------------------------------------------------------------------------
# Parameter init (deterministic; matches nn.LSTM / nn.Linear shapes, U(-1/sqrt(H), 1/sqrt(H))).
# ----------------------------------------------------------------------------
def init_params(key, enc_in, d_model, e_layers, c_out):
    bound = 1.0 / math.sqrt(d_model)
    lstm_params = []
    in_dim = enc_in
    for _ in range(e_layers):
        key, k1, k2, k3, k4 = jax.random.split(key, 5)
        w_ih = jax.random.uniform(k1, (4 * d_model, in_dim), jnp.float32, -bound, bound)
        w_hh = jax.random.uniform(k2, (4 * d_model, d_model), jnp.float32, -bound, bound)
        b_ih = jax.random.uniform(k3, (4 * d_model,), jnp.float32, -bound, bound)
        b_hh = jax.random.uniform(k4, (4 * d_model,), jnp.float32, -bound, bound)
        # stored transposed so the kernel computes x @ W (row-vector convention)
        lstm_params.append((w_ih.T, w_hh.T, (b_ih + b_hh)[None, :]))
        in_dim = d_model
    key, kp1, kp2 = jax.random.split(key, 3)
    proj_w = jax.random.uniform(kp1, (d_model, c_out), jnp.float32, -bound, bound)
    proj_b = jax.random.uniform(kp2, (1, c_out), jnp.float32, -bound, bound)
    return lstm_params, (proj_w, proj_b)


# ----------------------------------------------------------------------------
# Full forward (mirrors Model.forward in eval mode).
# ----------------------------------------------------------------------------
def model_forward(x_enc, x_mark_enc, x_dec, x_mark_dec, lstm_params, proj_params, mask=None):
    # x_enc: [B, T, enc_in] (batch_first, as in PyTorch); marks/decoder inputs unused.
    return fused_lstm_forward(x_enc, lstm_params, proj_params)   # [B, T, c_out]


if __name__ == "__main__":
    # configs: enc_in=4, d_model=32, e_layers=2, dropout=0.1, seq_len=8, c_out=4,
    #          task_name='soft_sensor'
    B, T, enc_in, d_model, e_layers, c_out = 2, 8, 4, 32, 2, 4

    key = jax.random.PRNGKey(0)
    key, kx = jax.random.split(key)
    x_enc = jax.random.normal(kx, (B, T, enc_in), jnp.float32)
    x_mark_enc = jnp.zeros((B, T, 1), jnp.float32)   # unused by forward
    x_dec = jnp.zeros((B, T, enc_in), jnp.float32)   # unused by forward
    x_mark_dec = jnp.zeros((B, T, 1), jnp.float32)   # unused by forward

    lstm_params, proj_params = init_params(key, enc_in, d_model, e_layers, c_out)

    out = model_forward(x_enc, x_mark_enc, x_dec, x_mark_dec, lstm_params, proj_params)
    out = jax.block_until_ready(out)
    assert out.shape == (B, T, c_out), out.shape
    print("KERNEL_OK")
</pallas_src>

<mosaic_0001>
module attributes {stable_mosaic.version = 11 : i64} {
  func.func @kernel(%arg0: memref<16x4xf32, #tpu.memory_space<vmem>>, %arg1: memref<4x128xf32, #tpu.memory_space<vmem>>, %arg2: memref<32x128xf32, #tpu.memory_space<vmem>>, %arg3: memref<1x128xf32, #tpu.memory_space<vmem>>, %arg4: memref<32x128xf32, #tpu.memory_space<vmem>>, %arg5: memref<32x128xf32, #tpu.memory_space<vmem>>, %arg6: memref<1x128xf32, #tpu.memory_space<vmem>>, %arg7: memref<32x4xf32, #tpu.memory_space<vmem>>, %arg8: memref<1x4xf32, #tpu.memory_space<vmem>>, %arg9: memref<16x4xf32, #tpu.memory_space<vmem>>, %arg10: memref<16x32xf32, #tpu.memory_space<vmem>>) attributes {dimension_semantics = [], scalar_prefetch = 0 : i64, scratch_operands = 1 : i64, tpu.core_type = #tpu.core_type<tc>} {
    %0 = tpu.iota {dimensions = array<i32: 1>} : vector<2x128xi32>
    %c64_i32 = arith.constant 64 : i32
    %1 = vector.broadcast %c64_i32 : i32 to vector<2x128xi32>
    %2 = arith.cmpi sge, %0, %1 : vector<2x128xi32>
    %c96_i32 = arith.constant 96 : i32
    %3 = vector.broadcast %c96_i32 : i32 to vector<2x128xi32>
    %4 = arith.cmpi slt, %0, %3 : vector<2x128xi32>
    %5 = arith.andi %2, %4 : vector<2x128xi1>
    %cst = arith.constant 1.000000e+00 : f32
    %cst_0 = arith.constant 5.000000e-01 : f32
    %6 = vector.broadcast %cst : f32 to vector<2x128xf32>
    %7 = vector.broadcast %cst_0 : f32 to vector<2x128xf32>
    %8 = arith.select %5, %6, %7 : vector<2x128xi1>, vector<2x128xf32>
    %cst_1 = arith.constant 0.000000e+00 : f32
    %cst_2 = arith.constant 5.000000e-01 : f32
    %9 = vector.broadcast %cst_1 : f32 to vector<2x128xf32>
    %10 = vector.broadcast %cst_2 : f32 to vector<2x128xf32>
    %11 = arith.select %5, %9, %10 : vector<2x128xi1>, vector<2x128xf32>
    %12 = tpu.iota {dimensions = array<i32: 1>} : vector<1x128xi32>
    %c64_i32_3 = arith.constant 64 : i32
    %13 = vector.broadcast %c64_i32_3 : i32 to vector<1x128xi32>
    %14 = arith.cmpi sge, %12, %13 : vector<1x128xi32>
    %c96_i32_4 = arith.constant 96 : i32
    %15 = vector.broadcast %c96_i32_4 : i32 to vector<1x128xi32>
    %16 = arith.cmpi slt, %12, %15 : vector<1x128xi32>
    %17 = arith.andi %14, %16 : vector<1x128xi1>
    %cst_5 = arith.constant 1.000000e+00 : f32
    %cst_6 = arith.constant 5.000000e-01 : f32
    %18 = vector.broadcast %cst_5 : f32 to vector<1x128xf32>
    %19 = vector.broadcast %cst_6 : f32 to vector<1x128xf32>
    %20 = arith.select %17, %18, %19 : vector<1x128xi1>, vector<1x128xf32>
    %c0 = arith.constant 0 : index
    %c0_7 = arith.constant 0 : index
    %21 = vector.load %arg0[%c0, %c0_7] : memref<16x4xf32, #tpu.memory_space<vmem>>, vector<16x4xf32>
    %c0_8 = arith.constant 0 : index
    %c0_9 = arith.constant 0 : index
    %22 = vector.load %arg1[%c0_8, %c0_9] : memref<4x128xf32, #tpu.memory_space<vmem>>, vector<4x128xf32>
    %c0_10 = arith.constant 0 : index
    %c0_11 = arith.constant 0 : index
    %23 = vector.load %arg2[%c0_10, %c0_11] : memref<32x128xf32, #tpu.memory_space<vmem>>, vector<32x128xf32>
    %24 = vector.broadcast %20 : vector<1x128xf32> to vector<32x128xf32>
    %25 = arith.mulf %23, %24 : vector<32x128xf32>
    %c0_12 = arith.constant 0 : index
    %c0_13 = arith.constant 0 : index
    %26 = vector.load %arg3[%c0_12, %c0_13] : memref<1x128xf32, #tpu.memory_space<vmem>>, vector<1x128xf32>
    %cst_14 = arith.constant dense<0.000000e+00> : vector<16x128xf32>
    %27 = tpu.matmul %21, %22, %cst_14 {dimension_numbers = #tpu.dot_dimension_numbers<[1], [0], [0], [1], [0, 0, 1, 1], [], []>} : vector<16x4xf32>, vector<4x128xf32>, vector<16x128xf32> -> vector<16x128xf32>
    %28 = vector.broadcast %26 : vector<1x128xf32> to vector<16x128xf32>
    %29 = arith.addf %27, %28 : vector<16x128xf32>
    %30 = vector.broadcast %20 : vector<1x128xf32> to vector<16x128xf32>
    %31 = arith.mulf %29, %30 : vector<16x128xf32>
    %32 = vector.extract_strided_slice %31 {offsets = [0, 0], sizes = [2, 128], strides = [1, 1]} : vector<16x128xf32> to vector<2x128xf32>
    %33 = math.tanh %32 : vector<2x128xf32>
    %34 = arith.mulf %33, %8 : vector<2x128xf32>
    %35 = arith.addf %34, %11 : vector<2x128xf32>
    %36 = vector.extract_strided_slice %35 {offsets = [0, 0], sizes = [2, 32], strides = [1, 1]} : vector<2x128xf32> to vector<2x32xf32>
    %37 = vector.extract_strided_slice %35 {offsets = [0, 64], sizes = [2, 32], strides = [1, 1]} : vector<2x128xf32> to vector<2x32xf32>
    %38 = vector.extract_strided_slice %35 {offsets = [0, 96], sizes = [2, 32], strides = [1, 1]} : vector<2x128xf32> to vector<2x32xf32>
    %39 = arith.mulf %36, %37 : vector<2x32xf32>
    %40 = math.tanh %39 : vector<2x32xf32>
    %41 = arith.mulf %38, %40 : vector<2x32xf32>
    %c0_15 = arith.constant 0 : index
    %c0_16 = arith.constant 0 : index
    %42 = vector.load %arg10[%c0_15, %c0_16] : memref<16x32xf32, #tpu.memory_space<vmem>>, vector<2x32xf32>
    tpu.vector_store %arg10[%c0_15, %c0_16], %41 {strides = array<i32>} : memref<16x32xf32, #tpu.memory_space<vmem>>, vector<2x32xf32>,
    %43 = vector.extract_strided_slice %31 {offsets = [2, 0], sizes = [2, 128], strides = [1, 1]} : vector<16x128xf32> to vector<2x128xf32>
    %cst_17 = arith.constant dense<0.000000e+00> : vector<2x128xf32>
    %44 = tpu.matmul %41, %25, %cst_17 {dimension_numbers = #tpu.dot_dimension_numbers<[1], [0], [0], [1], [0, 0, 1, 1], [], []>} : vector<2x32xf32>, vector<32x128xf32>, vector<2x128xf32> -> vector<2x128xf32>
    %45 = arith.addf %43, %44 : vector<2x128xf32>
    %46 = math.tanh %45 : vector<2x128xf32>
    %47 = arith.mulf %46, %8 : vector<2x128xf32>
    %48 = arith.addf %47, %11 : vector<2x128xf32>
    %49 = vector.extract_strided_slice %48 {offsets = [0, 0], sizes = [2, 32], strides = [1, 1]} : vector<2x128xf32> to vector<2x32xf32>
    %50 = vector.extract_strided_slice %48 {offsets = [0, 32], sizes = [2, 32], strides = [1, 1]} : vector<2x128xf32> to vector<2x32xf32>
    %51 = vector.extract_strided_slice %48 {offsets = [0, 64], sizes = [2, 32], strides = [1, 1]} : vector<2x128xf32> to vector<2x32xf32>
    %52 = vector.extract_strided_slice %48 {offsets = [0, 96], sizes = [2, 32], strides = [1, 1]} : vector<2x128xf32> to vector<2x32xf32>
    %53 = arith.mulf %50, %39 : vector<2x32xf32>
    %54 = arith.mulf %49, %51 : vector<2x32xf32>
    %55 = arith.addf %53, %54 : vector<2x32xf32>
    %56 = math.tanh %55 : vector<2x32xf32>
    %57 = arith.mulf %52, %56 : vector<2x32xf32>
    %c2 = arith.constant 2 : index
    %c0_18 = arith.constant 0 : index
    %58 = vector.load %arg10[%c2, %c0_18] : memref<16x32xf32, #tpu.memory_space<vmem>>, vector<2x32xf32>
    tpu.vector_store %arg10[%c2, %c0_18], %57 {strides = array<i32>} : memref<16x32xf32, #tpu.memory_space<vmem>>, vector<2x32xf32>,
    %59 = vector.extract_strided_slice %31 {offsets = [4, 0], sizes = [2, 128], strides = [1, 1]} : vector<16x128xf32> to vector<2x128xf32>
    %cst_19 = arith.constant dense<0.000000e+00> : vector<2x128xf32>
    %60 = tpu.matmul %57, %25, %cst_19 {dimension_numbers = #tpu.dot_dimension_numbers<[1], [0], [0], [1], [0, 0, 1, 1], [], []>} : vector<2x32xf32>, vector<32x128xf32>, vector<2x128xf32> -> vector<2x128xf32>
    %61 = arith.addf %59, %60 : vector<2x128xf32>
    %62 = math.tanh %61 : vector<2x128xf32>
    %63 = arith.mulf %62, %8 : vector<2x128xf32>
    %64 = arith.addf %63, %11 : vector<2x128xf32>
    %65 = vector.extract_strided_slice %64 {offsets = [0, 0], sizes = [2, 32], strides = [1, 1]} : vector<2x128xf32> to vector<2x32xf32>
    %66 = vector.extract_strided_slice %64 {offsets = [0, 32], sizes = [2, 32], strides = [1, 1]} : vector<2x128xf32> to vector<2x32xf32>
    %67 = vector.extract_strided_slice %64 {offsets = [0, 64], sizes = [2, 32], strides = [1, 1]} : vector<2x128xf32> to vector<2x32xf32>
    %68 = vector.extract_strided_slice %64 {offsets = [0, 96], sizes = [2, 32], strides = [1, 1]} : vector<2x128xf32> to vector<2x32xf32>
    %69 = arith.mulf %66, %55 : vector<2x32xf32>
    %70 = arith.mulf %65, %67 : vector<2x32xf32>
    %71 = arith.addf %69, %70 : vector<2x32xf32>
    %72 = math.tanh %71 : vector<2x32xf32>
    %73 = arith.mulf %68, %72 : vector<2x32xf32>
    %c4 = arith.constant 4 : index
    %c0_20 = arith.constant 0 : index
    %74 = vector.load %arg10[%c4, %c0_20] : memref<16x32xf32, #tpu.memory_space<vmem>>, vector<2x32xf32>
    tpu.vector_store %arg10[%c4, %c0_20], %73 {strides = array<i32>} : memref<16x32xf32, #tpu.memory_space<vmem>>, vector<2x32xf32>,
    %75 = vector.extract_strided_slice %31 {offsets = [6, 0], sizes = [2, 128], strides = [1, 1]} : vector<16x128xf32> to vector<2x128xf32>
    %cst_21 = arith.constant dense<0.000000e+00> : vector<2x128xf32>
    %76 = tpu.matmul %73, %25, %cst_21 {dimension_numbers = #tpu.dot_dimension_numbers<[1], [0], [0], [1], [0, 0, 1, 1], [], []>} : vector<2x32xf32>, vector<32x128xf32>, vector<2x128xf32> -> vector<2x128xf32>
    %77 = arith.addf %75, %76 : vector<2x128xf32>
    %78 = math.tanh %77 : vector<2x128xf32>
    %79 = arith.mulf %78, %8 : vector<2x128xf32>
    %80 = arith.addf %79, %11 : vector<2x128xf32>
    %81 = vector.extract_strided_slice %80 {offsets = [0, 0], sizes = [2, 32], strides = [1, 1]} : vector<2x128xf32> to vector<2x32xf32>
    %82 = vector.extract_strided_slice %80 {offsets = [0, 32], sizes = [2, 32], strides = [1, 1]} : vector<2x128xf32> to vector<2x32xf32>
    %83 = vector.extract_strided_slice %80 {offsets = [0, 64], sizes = [2, 32], strides = [1, 1]} : vector<2x128xf32> to vector<2x32xf32>
    %84 = vector.extract_strided_slice %80 {offsets = [0, 96], sizes = [2, 32], strides = [1, 1]} : vector<2x128xf32> to vector<2x32xf32>
    %85 = arith.mulf %82, %71 : vector<2x32xf32>
    %86 = arith.mulf %81, %83 : vector<2x32xf32>
    %87 = arith.addf %85, %86 : vector<2x32xf32>
    %88 = math.tanh %87 : vector<2x32xf32>
    %89 = arith.mulf %84, %88 : vector<2x32xf32>
    %c6 = arith.constant 6 : index
    %c0_22 = arith.constant 0 : index
    %90 = vector.load %arg10[%c6, %c0_22] : memref<16x32xf32, #tpu.memory_space<vmem>>, vector<2x32xf32>
    tpu.vector_store %arg10[%c6, %c0_22], %89 {strides = array<i32>} : memref<16x32xf32, #tpu.memory_space<vmem>>, vector<2x32xf32>,
    %91 = vector.extract_strided_slice %31 {offsets = [8, 0], sizes = [2, 128], strides = [1, 1]} : vector<16x128xf32> to vector<2x128xf32>
    %cst_23 = arith.constant dense<0.000000e+00> : vector<2x128xf32>
    %92 = tpu.matmul %89, %25, %cst_23 {dimension_numbers = #tpu.dot_dimension_numbers<[1], [0], [0], [1], [0, 0, 1, 1], [], []>} : vector<2x32xf32>, vector<32x128xf32>, vector<2x128xf32> -> vector<2x128xf32>
    %93 = arith.addf %91, %92 : vector<2x128xf32>
    %94 = math.tanh %93 : vector<2x128xf32>
    %95 = arith.mulf %94, %8 : vector<2x128xf32>
    %96 = arith.addf %95, %11 : vector<2x128xf32>
    %97 = vector.extract_strided_slice %96 {offsets = [0, 0], sizes = [2, 32], strides = [1, 1]} : vector<2x128xf32> to vector<2x32xf32>
    %98 = vector.extract_strided_slice %96 {offsets = [0, 32], sizes = [2, 32], strides = [1, 1]} : vector<2x128xf32> to vector<2x32xf32>
    %99 = vector.extract_strided_slice %96 {offsets = [0, 64], sizes = [2, 32], strides = [1, 1]} : vector<2x128xf32> to vector<2x32xf32>
    %100 = vector.extract_strided_slice %96 {offsets = [0, 96], sizes = [2, 32], strides = [1, 1]} : vector<2x128xf32> to vector<2x32xf32>
    %101 = arith.mulf %98, %87 : vector<2x32xf32>
    %102 = arith.mulf %97, %99 : vector<2x32xf32>
    %103 = arith.addf %101, %102 : vector<2x32xf32>
    %104 = math.tanh %103 : vector<2x32xf32>
    %105 = arith.mulf %100, %104 : vector<2x32xf32>
    %c8 = arith.constant 8 : index
    %c0_24 = arith.constant 0 : index
    %106 = vector.load %arg10[%c8, %c0_24] : memref<16x32xf32, #tpu.memory_space<vmem>>, vector<2x32xf32>
    tpu.vector_store %arg10[%c8, %c0_24], %105 {strides = array<i32>} : memref<16x32xf32, #tpu.memory_space<vmem>>, vector<2x32xf32>,
    %107 = vector.extract_strided_slice %31 {offsets = [10, 0], sizes = [2, 128], strides = [1, 1]} : vector<16x128xf32> to vector<2x128xf32>
    %cst_25 = arith.constant dense<0.000000e+00> : vector<2x128xf32>
    %108 = tpu.matmul %105, %25, %cst_25 {dimension_numbers = #tpu.dot_dimension_numbers<[1], [0], [0], [1], [0, 0, 1, 1], [], []>} : vector<2x32xf32>, vector<32x128xf32>, vector<2x128xf32> -> vector<2x128xf32>
    %109 = arith.addf %107, %108 : vector<2x128xf32>
    %110 = math.tanh %109 : vector<2x128xf32>
    %111 = arith.mulf %110, %8 : vector<2x128xf32>
    %112 = arith.addf %111, %11 : vector<2x128xf32>
    %113 = vector.extract_strided_slice %112 {offsets = [0, 0], sizes = [2, 32], strides = [1, 1]} : vector<2x128xf32> to vector<2x32xf32>
    %114 = vector.extract_strided_slice %112 {offsets = [0, 32], sizes = [2, 32], strides = [1, 1]} : vector<2x128xf32> to vector<2x32xf32>
    %115 = vector.extract_strided_slice %112 {offsets = [0, 64], sizes = [2, 32], strides = [1, 1]} : vector<2x128xf32> to vector<2x32xf32>
    %116 = vector.extract_strided_slice %112 {offsets = [0, 96], sizes = [2, 32], strides = [1, 1]} : vector<2x128xf32> to vector<2x32xf32>
    %117 = arith.mulf %114, %103 : vector<2x32xf32>
    %118 = arith.mulf %113, %115 : vector<2x32xf32>
    %119 = arith.addf %117, %118 : vector<2x32xf32>
    %120 = math.tanh %119 : vector<2x32xf32>
    %121 = arith.mulf %116, %120 : vector<2x32xf32>
    %c10 = arith.constant 10 : index
    %c0_26 = arith.constant 0 : index
    %122 = vector.load %arg10[%c10, %c0_26] : memref<16x32xf32, #tpu.memory_space<vmem>>, vector<2x32xf32>
    tpu.vector_store %arg10[%c10, %c0_26], %121 {strides = array<i32>} : memref<16x32xf32, #tpu.memory_space<vmem>>, vector<2x32xf32>,
    %123 = vector.extract_strided_slice %31 {offsets = [12, 0], sizes = [2, 128], strides = [1, 1]} : vector<16x128xf32> to vector<2x128xf32>
    %cst_27 = arith.constant dense<0.000000e+00> : vector<2x128xf32>
    %124 = tpu.matmul %121, %25, %cst_27 {dimension_numbers = #tpu.dot_dimension_numbers<[1], [0], [0], [1], [0, 0, 1, 1], [], []>} : vector<2x32xf32>, vector<32x128xf32>, vector<2x128xf32> -> vector<2x128xf32>
    %125 = arith.addf %123, %124 : vector<2x128xf32>
    %126 = math.tanh %125 : vector<2x128xf32>
    %127 = arith.mulf %126, %8 : vector<2x128xf32>
    %128 = arith.addf %127, %11 : vector<2x128xf32>
    %129 = vector.extract_strided_slice %128 {offsets = [0, 0], sizes = [2, 32], strides = [1, 1]} : vector<2x128xf32> to vector<2x32xf32>
    %130 = vector.extract_strided_slice %128 {offsets = [0, 32], sizes = [2, 32], strides = [1, 1]} : vector<2x128xf32> to vector<2x32xf32>
    %131 = vector.extract_strided_slice %128 {offsets = [0, 64], sizes = [2, 32], strides = [1, 1]} : vector<2x128xf32> to vector<2x32xf32>
    %132 = vector.extract_strided_slice %128 {offsets = [0, 96], sizes = [2, 32], strides = [1, 1]} : vector<2x128xf32> to vector<2x32xf32>
    %133 = arith.mulf %130, %119 : vector<2x32xf32>
    %134 = arith.mulf %129, %131 : vector<2x32xf32>
    %135 = arith.addf %133, %134 : vector<2x32xf32>
    %136 = math.tanh %135 : vector<2x32xf32>
    %137 = arith.mulf %132, %136 : vector<2x32xf32>
    %c12 = arith.constant 12 : index
    %c0_28 = arith.constant 0 : index
    %138 = vector.load %arg10[%c12, %c0_28] : memref<16x32xf32, #tpu.memory_space<vmem>>, vector<2x32xf32>
    tpu.vector_store %arg10[%c12, %c0_28], %137 {strides = array<i32>} : memref<16x32xf32, #tpu.memory_space<vmem>>, vector<2x32xf32>,
    %139 = vector.extract_strided_slice %31 {offsets = [14, 0], sizes = [2, 128], strides = [1, 1]} : vector<16x128xf32> to vector<2x128xf32>
    %cst_29 = arith.constant dense<0.000000e+00> : vector<2x128xf32>
    %140 = tpu.matmul %137, %25, %cst_29 {dimension_numbers = #tpu.dot_dimension_numbers<[1], [0], [0], [1], [0, 0, 1, 1], [], []>} : vector<2x32xf32>, vector<32x128xf32>, vector<2x128xf32> -> vector<2x128xf32>
    %141 = arith.addf %139, %140 : vector<2x128xf32>
    %142 = math.tanh %141 : vector<2x128xf32>
    %143 = arith.mulf %142, %8 : vector<2x128xf32>
    %144 = arith.addf %143, %11 : vector<2x128xf32>
    %145 = vector.extract_strided_slice %144 {offsets = [0, 0], sizes = [2, 32], strides = [1, 1]} : vector<2x128xf32> to vector<2x32xf32>
    %146 = vector.extract_strided_slice %144 {offsets = [0, 32], sizes = [2, 32], strides = [1, 1]} : vector<2x128xf32> to vector<2x32xf32>
    %147 = vector.extract_strided_slice %144 {offsets = [0, 64], sizes = [2, 32], strides = [1, 1]} : vector<2x128xf32> to vector<2x32xf32>
    %148 = vector.extract_strided_slice %144 {offsets = [0, 96], sizes = [2, 32], strides = [1, 1]} : vector<2x128xf32> to vector<2x32xf32>
    %149 = arith.mulf %146, %135 : vector<2x32xf32>
    %150 = arith.mulf %145, %147 : vector<2x32xf32>
    %151 = arith.addf %149, %150 : vector<2x32xf32>
    %152 = math.tanh %151 : vector<2x32xf32>
    %153 = arith.mulf %148, %152 : vector<2x32xf32>
    %c14 = arith.constant 14 : index
    %c0_30 = arith.constant 0 : index
    %154 = vector.load %arg10[%c14, %c0_30] : memref<16x32xf32, #tpu.memory_space<vmem>>, vector<2x32xf32>
    tpu.vector_store %arg10[%c14, %c0_30], %153 {strides = array<i32>} : memref<16x32xf32, #tpu.memory_space<vmem>>, vector<2x32xf32>,
    %c0_31 = arith.constant 0 : index
    %c0_32 = arith.constant 0 : index
    %155 = vector.load %arg10[%c0_31, %c0_32] : memref<16x32xf32, #tpu.memory_space<vmem>>, vector<16x32xf32>
    %c0_33 = arith.constant 0 : index
    %c0_34 = arith.constant 0 : index
    %156 = vector.load %arg4[%c0_33, %c0_34] : memref<32x128xf32, #tpu.memory_space<vmem>>, vector<32x128xf32>
    %c0_35 = arith.constant 0 : index
    %c0_36 = arith.constant 0 : index
    %157 = vector.load %arg5[%c0_35, %c0_36] : memref<32x128xf32, #tpu.memory_space<vmem>>, vector<32x128xf32>
    %158 = vector.broadcast %20 : vector<1x128xf32> to vector<32x128xf32>
    %159 = arith.mulf %157, %158 : vector<32x128xf32>
    %c0_37 = arith.constant 0 : index
    %c0_38 = arith.constant 0 : index
    %160 = vector.load %arg6[%c0_37, %c0_38] : memref<1x128xf32, #tpu.memory_space<vmem>>, vector<1x128xf32>
    %cst_39 = arith.constant dense<0.000000e+00> : vector<16x128xf32>
    %161 = tpu.matmul %155, %156, %cst_39 {dimension_numbers = #tpu.dot_dimension_numbers<[1], [0], [0], [1], [0, 0, 1, 1], [], []>} : vector<16x32xf32>, vector<32x128xf32>, vector<16x128xf32> -> vector<16x128xf32>
    %162 = vector.broadcast %160 : vector<1x128xf32> to vector<16x128xf32>
    %163 = arith.addf %161, %162 : vector<16x128xf32>
    %164 = vector.broadcast %20 : vector<1x128xf32> to vector<16x128xf32>
    %165 = arith.mulf %163, %164 : vector<16x128xf32>
    %166 = vector.extract_strided_slice %165 {offsets = [0, 0], sizes = [2, 128], strides = [1, 1]} : vector<16x128xf32> to vector<2x128xf32>
    %167 = math.tanh %166 : vector<2x128xf32>
    %168 = arith.mulf %167, %8 : vector<2x128xf32>
    %169 = arith.addf %168, %11 : vector<2x128xf32>
    %170 = vector.extract_strided_slice %169 {offsets = [0, 0], sizes = [2, 32], strides = [1, 1]} : vector<2x128xf32> to vector<2x32xf32>
    %171 = vector.extract_strided_slice %169 {offsets = [0, 64], sizes = [2, 32], strides = [1, 1]} : vector<2x128xf32> to vector<2x32xf32>
    %172 = vector.extract_strided_slice %169 {offsets = [0, 96], sizes = [2, 32], strides = [1, 1]} : vector<2x128xf32> to vector<2x32xf32>
    %173 = arith.mulf %170, %171 : vector<2x32xf32>
    %174 = math.tanh %173 : vector<2x32xf32>
    %175 = arith.mulf %172, %174 : vector<2x32xf32>
    %c0_40 = arith.constant 0 : index
    %c0_41 = arith.constant 0 : index
    %176 = vector.load %arg10[%c0_40, %c0_41] : memref<16x32xf32, #tpu.memory_space<vmem>>, vector<2x32xf32>
    tpu.vector_store %arg10[%c0_40, %c0_41], %175 {strides = array<i32>} : memref<16x32xf32, #tpu.memory_space<vmem>>, vector<2x32xf32>,
    %177 = vector.extract_strided_slice %165 {offsets = [2, 0], sizes = [2, 128], strides = [1, 1]} : vector<16x128xf32> to vector<2x128xf32>
    %cst_42 = arith.constant dense<0.000000e+00> : vector<2x128xf32>
    %178 = tpu.matmul %175, %159, %cst_42 {dimension_numbers = #tpu.dot_dimension_numbers<[1], [0], [0], [1], [0, 0, 1, 1], [], []>} : vector<2x32xf32>, vector<32x128xf32>, vector<2x128xf32> -> vector<2x128xf32>
    %179 = arith.addf %177, %178 : vector<2x128xf32>
    %180 = math.tanh %179 : vector<2x128xf32>
    %181 = arith.mulf %180, %8 : vector<2x128xf32>
    %182 = arith.addf %181, %11 : vector<2x128xf32>
    %183 = vector.extract_strided_slice %182 {offsets = [0, 0], sizes = [2, 32], strides = [1, 1]} : vector<2x128xf32> to vector<2x32xf32>
    %184 = vector.extract_strided_slice %182 {offsets = [0, 32], sizes = [2, 32], strides = [1, 1]} : vector<2x128xf32> to vector<2x32xf32>
    %185 = vector.extract_strided_slice %182 {offsets = [0, 64], sizes = [2, 32], strides = [1, 1]} : vector<2x128xf32> to vector<2x32xf32>
    %186 = vector.extract_strided_slice %182 {offsets = [0, 96], sizes = [2, 32], strides = [1, 1]} : vector<2x128xf32> to vector<2x32xf32>
    %187 = arith.mulf %184, %173 : vector<2x32xf32>
    %188 = arith.mulf %183, %185 : vector<2x32xf32>
    %189 = arith.addf %187, %188 : vector<2x32xf32>
    %190 = math.tanh %189 : vector<2x32xf32>
    %191 = arith.mulf %186, %190 : vector<2x32xf32>
    %c2_43 = arith.constant 2 : index
    %c0_44 = arith.constant 0 : index
    %192 = vector.load %arg10[%c2_43, %c0_44] : memref<16x32xf32, #tpu.memory_space<vmem>>, vector<2x32xf32>
    tpu.vector_store %arg10[%c2_43, %c0_44], %191 {strides = array<i32>} : memref<16x32xf32, #tpu.memory_space<vmem>>, vector<2x32xf32>,
    %193 = vector.extract_strided_slice %165 {offsets = [4, 0], sizes = [2, 128], strides = [1, 1]} : vector<16x128xf32> to vector<2x128xf32>
    %cst_45 = arith.constant dense<0.000000e+00> : vector<2x128xf32>
    %194 = tpu.matmul %191, %159, %cst_45 {dimension_numbers = #tpu.dot_dimension_numbers<[1], [0], [0], [1], [0, 0, 1, 1], [], []>} : vector<2x32xf32>, vector<32x128xf32>, vector<2x128xf32> -> vector<2x128xf32>
    %195 = arith.addf %193, %194 : vector<2x128xf32>
    %196 = math.tanh %195 : vector<2x128xf32>
    %197 = arith.mulf %196, %8 : vector<2x128xf32>
    %198 = arith.addf %197, %11 : vector<2x128xf32>
    %199 = vector.extract_strided_slice %198 {offsets = [0, 0], sizes = [2, 32], strides = [1, 1]} : vector<2x128xf32> to vector<2x32xf32>
    %200 = vector.extract_strided_slice %198 {offsets = [0, 32], sizes = [2, 32], strides = [1, 1]} : vector<2x128xf32> to vector<2x32xf32>
    %201 = vector.extract_strided_slice %198 {offsets = [0, 64], sizes = [2, 32], strides = [1, 1]} : vector<2x128xf32> to vector<2x32xf32>
    %202 = vector.extract_strided_slice %198 {offsets = [0, 96], sizes = [2, 32], strides = [1, 1]} : vector<2x128xf32> to vector<2x32xf32>
    %203 = arith.mulf %200, %189 : vector<2x32xf32>
    %204 = arith.mulf %199, %201 : vector<2x32xf32>
    %205 = arith.addf %203, %204 : vector<2x32xf32>
    %206 = math.tanh %205 : vector<2x32xf32>
    %207 = arith.mulf %202, %206 : vector<2x32xf32>
    %c4_46 = arith.constant 4 : index
    %c0_47 = arith.constant 0 : index
    %208 = vector.load %arg10[%c4_46, %c0_47] : memref<16x32xf32, #tpu.memory_space<vmem>>, vector<2x32xf32>
    tpu.vector_store %arg10[%c4_46, %c0_47], %207 {strides = array<i32>} : memref<16x32xf32, #tpu.memory_space<vmem>>, vector<2x32xf32>,
    %209 = vector.extract_strided_slice %165 {offsets = [6, 0], sizes = [2, 128], strides = [1, 1]} : vector<16x128xf32> to vector<2x128xf32>
    %cst_48 = arith.constant dense<0.000000e+00> : vector<2x128xf32>
    %210 = tpu.matmul %207, %159, %cst_48 {dimension_numbers = #tpu.dot_dimension_numbers<[1], [0], [0], [1], [0, 0, 1, 1], [], []>} : vector<2x32xf32>, vector<32x128xf32>, vector<2x128xf32> -> vector<2x128xf32>
    %211 = arith.addf %209, %210 : vector<2x128xf32>
    %212 = math.tanh %211 : vector<2x128xf32>
    %213 = arith.mulf %212, %8 : vector<2x128xf32>
    %214 = arith.addf %213, %11 : vector<2x128xf32>
    %215 = vector.extract_strided_slice %214 {offsets = [0, 0], sizes = [2, 32], strides = [1, 1]} : vector<2x128xf32> to vector<2x32xf32>
    %216 = vector.extract_strided_slice %214 {offsets = [0, 32], sizes = [2, 32], strides = [1, 1]} : vector<2x128xf32> to vector<2x32xf32>
    %217 = vector.extract_strided_slice %214 {offsets = [0, 64], sizes = [2, 32], strides = [1, 1]} : vector<2x128xf32> to vector<2x32xf32>
    %218 = vector.extract_strided_slice %214 {offsets = [0, 96], sizes = [2, 32], strides = [1, 1]} : vector<2x128xf32> to vector<2x32xf32>
    %219 = arith.mulf %216, %205 : vector<2x32xf32>
    %220 = arith.mulf %215, %217 : vector<2x32xf32>
    %221 = arith.addf %219, %220 : vector<2x32xf32>
    %222 = math.tanh %221 : vector<2x32xf32>
    %223 = arith.mulf %218, %222 : vector<2x32xf32>
    %c6_49 = arith.constant 6 : index
    %c0_50 = arith.constant 0 : index
    %224 = vector.load %arg10[%c6_49, %c0_50] : memref<16x32xf32, #tpu.memory_space<vmem>>, vector<2x32xf32>
    tpu.vector_store %arg10[%c6_49, %c0_50], %223 {strides = array<i32>} : memref<16x32xf32, #tpu.memory_space<vmem>>, vector<2x32xf32>,
    %225 = vector.extract_strided_slice %165 {offsets = [8, 0], sizes = [2, 128], strides = [1, 1]} : vector<16x128xf32> to vector<2x128xf32>
    %cst_51 = arith.constant dense<0.000000e+00> : vector<2x128xf32>
    %226 = tpu.matmul %223, %159, %cst_51 {dimension_numbers = #tpu.dot_dimension_numbers<[1], [0], [0], [1], [0, 0, 1, 1], [], []>} : vector<2x32xf32>, vector<32x128xf32>, vector<2x128xf32> -> vector<2x128xf32>
    %227 = arith.addf %225, %226 : vector<2x128xf32>
    %228 = math.tanh %227 : vector<2x128xf32>
    %229 = arith.mulf %228, %8 : vector<2x128xf32>
    %230 = arith.addf %229, %11 : vector<2x128xf32>
    %231 = vector.extract_strided_slice %230 {offsets = [0, 0], sizes = [2, 32], strides = [1, 1]} : vector<2x128xf32> to vector<2x32xf32>
    %232 = vector.extract_strided_slice %230 {offsets = [0, 32], sizes = [2, 32], strides = [1, 1]} : vector<2x128xf32> to vector<2x32xf32>
    %233 = vector.extract_strided_slice %230 {offsets = [0, 64], sizes = [2, 32], strides = [1, 1]} : vector<2x128xf32> to vector<2x32xf32>
    %234 = vector.extract_strided_slice %230 {offsets = [0, 96], sizes = [2, 32], strides = [1, 1]} : vector<2x128xf32> to vector<2x32xf32>
    %235 = arith.mulf %232, %221 : vector<2x32xf32>
    %236 = arith.mulf %231, %233 : vector<2x32xf32>
    %237 = arith.addf %235, %236 : vector<2x32xf32>
    %238 = math.tanh %237 : vector<2x32xf32>
    %239 = arith.mulf %234, %238 : vector<2x32xf32>
    %c8_52 = arith.constant 8 : index
    %c0_53 = arith.constant 0 : index
    %240 = vector.load %arg10[%c8_52, %c0_53] : memref<16x32xf32, #tpu.memory_space<vmem>>, vector<2x32xf32>
    tpu.vector_store %arg10[%c8_52, %c0_53], %239 {strides = array<i32>} : memref<16x32xf32, #tpu.memory_space<vmem>>, vector<2x32xf32>,
    %241 = vector.extract_strided_slice %165 {offsets = [10, 0], sizes = [2, 128], strides = [1, 1]} : vector<16x128xf32> to vector<2x128xf32>
    %cst_54 = arith.constant dense<0.000000e+00> : vector<2x128xf32>
    %242 = tpu.matmul %239, %159, %cst_54 {dimension_numbers = #tpu.dot_dimension_numbers<[1], [0], [0], [1], [0, 0, 1, 1], [], []>} : vector<2x32xf32>, vector<32x128xf32>, vector<2x128xf32> -> vector<2x128xf32>
    %243 = arith.addf %241, %242 : vector<2x128xf32>
    %244 = math.tanh %243 : vector<2x128xf32>
    %245 = arith.mulf %244, %8 : vector<2x128xf32>
    %246 = arith.addf %245, %11 : vector<2x128xf32>
    %247 = vector.extract_strided_slice %246 {offsets = [0, 0], sizes = [2, 32], strides = [1, 1]} : vector<2x128xf32> to vector<2x32xf32>
    %248 = vector.extract_strided_slice %246 {offsets = [0, 32], sizes = [2, 32], strides = [1, 1]} : vector<2x128xf32> to vector<2x32xf32>
    %249 = vector.extract_strided_slice %246 {offsets = [0, 64], sizes = [2, 32], strides = [1, 1]} : vector<2x128xf32> to vector<2x32xf32>
    %250 = vector.extract_strided_slice %246 {offsets = [0, 96], sizes = [2, 32], strides = [1, 1]} : vector<2x128xf32> to vector<2x32xf32>
    %251 = arith.mulf %248, %237 : vector<2x32xf32>
    %252 = arith.mulf %247, %249 : vector<2x32xf32>
    %253 = arith.addf %251, %252 : vector<2x32xf32>
    %254 = math.tanh %253 : vector<2x32xf32>
    %255 = arith.mulf %250, %254 : vector<2x32xf32>
    %c10_55 = arith.constant 10 : index
    %c0_56 = arith.constant 0 : index
    %256 = vector.load %arg10[%c10_55, %c0_56] : memref<16x32xf32, #tpu.memory_space<vmem>>, vector<2x32xf32>
    tpu.vector_store %arg10[%c10_55, %c0_56], %255 {strides = array<i32>} : memref<16x32xf32, #tpu.memory_space<vmem>>, vector<2x32xf32>,
    %257 = vector.extract_strided_slice %165 {offsets = [12, 0], sizes = [2, 128], strides = [1, 1]} : vector<16x128xf32> to vector<2x128xf32>
    %cst_57 = arith.constant dense<0.000000e+00> : vector<2x128xf32>
    %258 = tpu.matmul %255, %159, %cst_57 {dimension_numbers = #tpu.dot_dimension_numbers<[1], [0], [0], [1], [0, 0, 1, 1], [], []>} : vector<2x32xf32>, vector<32x128xf32>, vector<2x128xf32> -> vector<2x128xf32>
    %259 = arith.addf %257, %258 : vector<2x128xf32>
    %260 = math.tanh %259 : vector<2x128xf32>
    %261 = arith.mulf %260, %8 : vector<2x128xf32>
    %262 = arith.addf %261, %11 : vector<2x128xf32>
    %263 = vector.extract_strided_slice %262 {offsets = [0, 0], sizes = [2, 32], strides = [1, 1]} : vector<2x128xf32> to vector<2x32xf32>
    %264 = vector.extract_strided_slice %262 {offsets = [0, 32], sizes = [2, 32], strides = [1, 1]} : vector<2x128xf32> to vector<2x32xf32>
    %265 = vector.extract_strided_slice %262 {offsets = [0, 64], sizes = [2, 32], strides = [1, 1]} : vector<2x128xf32> to vector<2x32xf32>
    %266 = vector.extract_strided_slice %262 {offsets = [0, 96], sizes = [2, 32], strides = [1, 1]} : vector<2x128xf32> to vector<2x32xf32>
    %267 = arith.mulf %264, %253 : vector<2x32xf32>
    %268 = arith.mulf %263, %265 : vector<2x32xf32>
    %269 = arith.addf %267, %268 : vector<2x32xf32>
    %270 = math.tanh %269 : vector<2x32xf32>
    %271 = arith.mulf %266, %270 : vector<2x32xf32>
    %c12_58 = arith.constant 12 : index
    %c0_59 = arith.constant 0 : index
    %272 = vector.load %arg10[%c12_58, %c0_59] : memref<16x32xf32, #tpu.memory_space<vmem>>, vector<2x32xf32>
    tpu.vector_store %arg10[%c12_58, %c0_59], %271 {strides = array<i32>} : memref<16x32xf32, #tpu.memory_space<vmem>>, vector<2x32xf32>,
    %273 = vector.extract_strided_slice %165 {offsets = [14, 0], sizes = [2, 128], strides = [1, 1]} : vector<16x128xf32> to vector<2x128xf32>
    %cst_60 = arith.constant dense<0.000000e+00> : vector<2x128xf32>
    %274 = tpu.matmul %271, %159, %cst_60 {dimension_numbers = #tpu.dot_dimension_numbers<[1], [0], [0], [1], [0, 0, 1, 1], [], []>} : vector<2x32xf32>, vector<32x128xf32>, vector<2x128xf32> -> vector<2x128xf32>
    %275 = arith.addf %273, %274 : vector<2x128xf32>
    %276 = math.tanh %275 : vector<2x128xf32>
    %277 = arith.mulf %276, %8 : vector<2x128xf32>
    %278 = arith.addf %277, %11 : vector<2x128xf32>
    %279 = vector.extract_strided_slice %278 {offsets = [0, 0], sizes = [2, 32], strides = [1, 1]} : vector<2x128xf32> to vector<2x32xf32>
    %280 = vector.extract_strided_slice %278 {offsets = [0, 32], sizes = [2, 32], strides = [1, 1]} : vector<2x128xf32> to vector<2x32xf32>
    %281 = vector.extract_strided_slice %278 {offsets = [0, 64], sizes = [2, 32], strides = [1, 1]} : vector<2x128xf32> to vector<2x32xf32>
    %282 = vector.extract_strided_slice %278 {offsets = [0, 96], sizes = [2, 32], strides = [1, 1]} : vector<2x128xf32> to vector<2x32xf32>
    %283 = arith.mulf %280, %269 : vector<2x32xf32>
    %284 = arith.mulf %279, %281 : vector<2x32xf32>
    %285 = arith.addf %283, %284 : vector<2x32xf32>
    %286 = math.tanh %285 : vector<2x32xf32>
    %287 = arith.mulf %282, %286 : vector<2x32xf32>
    %c14_61 = arith.constant 14 : index
    %c0_62 = arith.constant 0 : index
    %288 = vector.load %arg10[%c14_61, %c0_62] : memref<16x32xf32, #tpu.memory_space<vmem>>, vector<2x32xf32>
    tpu.vector_store %arg10[%c14_61, %c0_62], %287 {strides = array<i32>} : memref<16x32xf32, #tpu.memory_space<vmem>>, vector<2x32xf32>,
    %c0_63 = arith.constant 0 : index
    %c0_64 = arith.constant 0 : index
    %289 = vector.load %arg10[%c0_63, %c0_64] : memref<16x32xf32, #tpu.memory_space<vmem>>, vector<16x32xf32>
    %c0_65 = arith.constant 0 : index
    %c0_66 = arith.constant 0 : index
    %290 = vector.load %arg7[%c0_65, %c0_66] : memref<32x4xf32, #tpu.memory_space<vmem>>, vector<32x4xf32>
    %cst_67 = arith.constant dense<0.000000e+00> : vector<16x4xf32>
    %291 = tpu.matmul %289, %290, %cst_67 {dimension_numbers = #tpu.dot_dimension_numbers<[1], [0], [0], [1], [0, 0, 1, 1], [], []>} : vector<16x32xf32>, vector<32x4xf32>, vector<16x4xf32> -> vector<16x4xf32>
    %c0_68 = arith.constant 0 : index
    %c0_69 = arith.constant 0 : index
    %292 = vector.load %arg8[%c0_68, %c0_69] : memref<1x4xf32, #tpu.memory_space<vmem>>, vector<1x4xf32>
    %293 = vector.broadcast %292 : vector<1x4xf32> to vector<16x4xf32>
    %294 = arith.addf %291, %293 : vector<16x4xf32>
    %c0_70 = arith.constant 0 : index
    %c0_71 = arith.constant 0 : index
    %295 = vector.load %arg9[%c0_70, %c0_71] : memref<16x4xf32, #tpu.memory_space<vmem>>, vector<16x4xf32>
    tpu.vector_store %arg9[%c0_70, %c0_71], %294 {strides = array<i32>} : memref<16x4xf32, #tpu.memory_space<vmem>>, vector<16x4xf32>,
    return
  }
}

</mosaic_0001>

<bundles_post_ra>
// kernel: tpu_custom_call.1
= control target key start
LH: loop header
LB: loop body
LE: loop exit
PB: predicated region body
PF: predicated region fallthrough
CT: control target
= control target key end

     0   :  { %14 = vsyncpa [#allocation4], 0  ;;  %s1557_s0 = inlined_call_operand.vmem [shape: f32[16,4], index: 0, kind: input, shape index: {}]   ;;  %s1558_s1 = inlined_call_operand.vmem [shape: f32[4,128], index: 1, kind: input, shape index: {}]   ;;  %s1559_s2 = inlined_call_operand.vmem [shape: f32[32,128], index: 2, kind: input, shape index: {}]   ;;  %s1560_s3 = inlined_call_operand.vmem [shape: f32[1,128], index: 3, kind: input, shape index: {}]   ;;  %s1561_s4 = inlined_call_operand.hbm [shape: f32[32,128], index: 4, kind: input, shape index: {}]   ;;  %s1562_s5 = inlined_call_operand.hbm [shape: f32[32,128], index: 5, kind: input, shape index: {}]   ;;  %s1563_s6 = inlined_call_operand.vmem [shape: f32[1,128], index: 6, kind: input, shape index: {}]   ;;  %s1564_s7 = inlined_call_operand.vmem [shape: f32[32,4], index: 7, kind: input, shape index: {}]   ;;  %s1565_s8 = inlined_call_operand.vmem [shape: f32[1,4], index: 8, kind: input, shape index: {}]   ;;  %s1566_s9 = inlined_call_operand.vmem [shape: f32[16,4], index: 9, kind: output, shape index: {}]  }
   0x1   :  { %s28_s11 = sshll.u32 %s1561_s4, 4  ;;  %s29_s11 = int_to_ptr.hbm [resolvable:$true] %s28_s11 }
   0x2   :  { %15 = vsyncpa [#allocation6], 0  ;;  %s1193_s12 = smov [#allocation3]   ;;  %s41_s16 = sshll.u32 %s1562_s5, 4  ;;  %s42_s16 = int_to_ptr.hbm [resolvable:$true] %s41_s16 }
   0x3   :  { %s30_s13 = sshll.u32 %s1193_s12, 4  ;;  %s1194_s17 = smov 128   ;;  %s31_s13 = int_to_ptr.vmem [resolvable:$true] %s30_s13 }
   0x4   :  { %s1195_s18 = smov 8   ;;  %s1196_s19 = smov [#allocation5]  }
   0x5   :  { %36 = dma.hbm_to_vmem [thread:$0]  %s29_s11, 512, %s31_s13, [#allocation4], %s1194_s17, %s1194_s17, %s1195_s18  }
   0x6   :  { %s43_s20 = sshll.u32 %s1196_s19, 4  ;;  %s44_s20 = int_to_ptr.vmem [resolvable:$true] %s43_s20 }
   0x7   :  { %49 = dma.hbm_to_vmem [thread:$0]  %s42_s16, 512, %s44_s20, [#allocation6], %s1194_s17, %s1194_s17, %s1195_s18  }
   0x8   :  { %1189 = dma.done.wait [#allocation4], 512  }
   0x9   :  { %1190 = vsyncadd [#allocation4], 4294966784 }
   0xa   :  { %1191 = dma.done.wait [#allocation6], 512  }
   0xb   :  { %1192 = vsyncadd [#allocation6], 4294966784  ;;  %vm93_vm0 = vcmask 1043456   ;;  %vm86_vm1 = vcmask 31744   ;;  %v73_v0 = vld [vmem:[%s1558_s1] sm:$0xf]  ;;  %v64_v2 = vlaneseq }
   0xc   :  { %v71_v1 = vld [vmem:[%s1557_s0] sm:$0xff]  ;;  %1045 = vmatpush.msk.msra.mxu0 %vm93_vm0, %v73_v0  ;;  %v1197_v5 = vmov 0.5   ;;  %s1198_s1 = smov 64   ;;  %s1200_s25 = smov 96   ;;  %v77_v18 = vld [vmem:[%s1559_s2 + $0x18] sm:$0xff]  ;;  %v76_v19 = vld [vmem:[%s1559_s2 + $0x10] sm:$0xff] }
   0xd   :  { %1046 = vmatmul.msk.f32.vlgmr.msra.gmra.mxu0 %vm86_vm1, %v71_v1  ;;  %v65_v3 = vand.u32 127, %v64_v2  ;;  %v1267_v4 = vld [vmem:[%s1560_s3] ss:$0 sm:$0xff]  ;;  %s1199_s3 = smov 32   ;;  %v75_v20 = vld [vmem:[%s1559_s2 + $0x8] sm:$0xff]  ;;  %vm140_vm5 = vcmask 254976  }
   0xe   :  { %v74_v23 = vld [vmem:[%s1559_s2] sm:$0xff]  ;;  %vm142_vm6 = vcmask 261120   ;;  %vm198_vm7 = vcmask 257026   ;;  %vm256_vm8 = vcmask 259076   ;;  %vm314_vm9 = vcmask 261126  }
   0xf   :  { %vm66_vm2 = vcmp.ge.s32.totalorder %v65_v3, 64  ;;  %vm67_vm3 = vcmp.lt.s32.totalorder %v65_v3, 96 }
  0x10   :  { %vm68_vm4 = vmand %vm66_vm2, %vm67_vm3 }
  0x11   :  { %v1269_v6 = vsel %vm68_vm4, 1.0, %v1197_v5  ;;  %v1276_v11 = vsel %vm68_vm4, 0.0, %v1197_v5 }
  0x12   :  { %v81_v21 = vmul.f32 %v77_v18, %v1269_v6  ;;  %v80_v22 = vmul.f32 %v76_v19, %v1269_v6  ;;  %v79_v24 = vmul.f32 %v75_v20, %v1269_v6  ;;  %v78_v25 = vmul.f32 %v74_v23, %v1269_v6  ;;  %v541_v23 = vld [vmem:[#allocation3 + $0x8] sm:$0xff] }
  0x14   :  { %157 = vmatpush.msra.mxu1 %v81_v21  ;;  %217 = vmatpush.msra.mxu3 %v81_v21 }
  0x15   :  { %384 = vmatpush.msra.mxu2 %v81_v21  ;;  %498 = vmatpush.msrb.mxu0 %v81_v21 }
  0x16   :  { %158 = vmatpush.msra.mxu1 %v80_v22  ;;  %218 = vmatpush.msra.mxu3 %v80_v22 }
  0x17   :  { %385 = vmatpush.msra.mxu2 %v80_v22  ;;  %499 = vmatpush.msrb.mxu0 %v80_v22 }
  0x18   :  { %159 = vmatpush.msra.mxu1 %v79_v24  ;;  %219 = vmatpush.msra.mxu3 %v79_v24 }
  0x19   :  { %386 = vmatpush.msra.mxu2 %v79_v24  ;;  %500 = vmatpush.msrb.mxu0 %v79_v24 }
  0x1a   :  { %160 = vmatpush.msra.mxu1 %v78_v25  ;;  %220 = vmatpush.msra.mxu3 %v78_v25 }
  0x1b   :  { %387 = vmatpush.msra.mxu2 %v78_v25  ;;  %501 = vmatpush.msrb.mxu0 %v78_v25 }
  0x1c   :  { %275 = vmatpush.msrb.mxu3 %v81_v21  ;;  %333 = vmatpush.msrb.mxu1 %v81_v21 }
  0x1e   :  { %276 = vmatpush.msrb.mxu3 %v80_v22  ;;  %334 = vmatpush.msrb.mxu1 %v80_v22 }
  0x20   :  { %277 = vmatpush.msrb.mxu3 %v79_v24  ;;  %335 = vmatpush.msrb.mxu1 %v79_v24 }
  0x22   :  { %278 = vmatpush.msrb.mxu3 %v78_v25  ;;  %336 = vmatpush.msrb.mxu1 %v78_v25 }
  0x8a   :  { %v114_v7 = vpop.f32.mrf.mxu0 }
  0x8b   :  { %v115_v8 = vadd.f32 %v1267_v4, %v114_v7 }
  0x8d   :  { %v1273_v9 = vmul.f32 %v115_v8, %v1269_v6 }
  0x8f   :  { %1077 = vtanh.f32 %v1273_v9 }
  0x95   :  { %v1078_v10 = vpop.eup %1077 }
  0x96   :  { %v123_v12 = vmul.f32 %v1078_v10, %v1269_v6 }
  0x98   :  { %v124_v13 = vadd.f32 %v123_v12, %v1276_v11 }
  0x9a   :  { %126 = vrot.lane.b32.xlu0 %v124_v13, %s1198_s1 }
 0x10c   :  { %v127_v14 = vpop.permute.xlu0 %126 }
 0x10d   :  { %v129_v15 = vmul.f32 %v127_v14, %v124_v13 }
 0x10f   :  { %1079 = vtanh.f32 %v129_v15  ;;  %v173_v16 = vrot.slane %v129_v15, 6 }
 0x111   :  { %174 = vrot.lane.b32.xlu2 %v173_v16, %s1199_s3  ;;  %v72_v16 = vld [vmem:[%s1557_s0 + $0x8] sm:$0xff] }
 0x112   :  { %1047 = vmatmul.msk.f32.gmra.mxu0 %vm86_vm1, %v72_v16 }
 0x115   :  { %v1080_v17 = vpop.eup %1079 }
 0x116   :  { %132 = vrot.lane.b32.xlu0 %v1080_v17, %s1200_s25 }
 0x16b   :  { %v175_v37 = vpop.permute.xlu2 %174 }
 0x188   :  { %v133_v26 = vpop.permute.xlu0 %132 }
 0x189   :  { %v135_v27 = vmul.f32 %v133_v26, %v124_v13 }
 0x18b   :  { %137 = vrot.lane.b32.xlu1 %v135_v27, %s1199_s3 }
 0x1fd   :  { %v138_v28 = vpop.permute.xlu1 %137 }
 0x1fe   :  { %141 = vst.msk [vmem:[#allocation2] sm:$0x3] %vm140_vm5, %v138_v28  ;;  %1048 = vmatmul.msk.f32.vlgmr.msra.gmra.mxu1 %vm142_vm6, %v138_v28  ;;  %v117_v28 = vpop.f32.mrf.mxu0 }
 0x27b   :  { %v162_v29 = vpop.f32.mrf.mxu1 }
 0x27c   :  { %v166_v30 = vrot.slane %v162_v29, 6  ;;  %v118_v29 = vadd.f32 %v1267_v4, %v117_v28 }
 0x27e   :  { %v168_v31 = vadd.f32 %v166_v30, %v1273_v9  ;;  %v1339_v30 = vmul.f32 %v118_v29, %v1269_v6 }
 0x280   :  { %1081 = vtanh.f32 %v168_v31 }
 0x286   :  { %v1082_v32 = vpop.eup %1081 }
 0x287   :  { %v170_v33 = vmul.f32 %v1082_v32, %v1269_v6 }
 0x289   :  { %v171_v34 = vadd.f32 %v170_v33, %v1276_v11 }
 0x28b   :  { %179 = vrot.lane.b32.xlu1 %v171_v34, %s1198_s1  ;;  %v177_v38 = vmul.f32 %v175_v37, %v171_v34 }
 0x2fd   :  { %v180_v35 = vpop.permute.xlu1 %179 }
 0x2fe   :  { %v182_v36 = vmul.f32 %v180_v35, %v171_v34 }
 0x300   :  { %184 = vrot.lane.b32.xlu2 %v182_v36, %s1199_s3  ;;  %v1347_v36 = vld [vmem:[%s1563_s6] ss:$0 sm:$0xff] }
 0x35a   :  { %v185_v39 = vpop.permute.xlu2 %184 }
 0x35b   :  { %v187_v40 = vadd.f32 %v185_v39, %v177_v38 }
 0x35d   :  { %1083 = vtanh.f32 %v187_v40  ;;  %v233_v54 = vrot.slane %v187_v40, 6 }
 0x363   :  { %v1084_v41 = vpop.eup %1083 }
 0x364   :  { %190 = vrot.lane.b32.xlu0 %v1084_v41, %s1198_s1 }
 0x3d6   :  { %v191_v42 = vpop.permute.xlu0 %190 }
 0x3d7   :  { %v193_v43 = vmul.f32 %v191_v42, %v171_v34 }
 0x3d9   :  { %v200_v44 = vrot.slane %v193_v43, 2 }
 0x3db   :  { %201 = vrot.lane.b32.xlu1 %v200_v44, %s1199_s3 }
 0x44d   :  { %v202_v45 = vpop.permute.xlu1 %201 }
 0x44e   :  { %1049 = vmatmul.msk.f32.vlgmr.msra.gmra.mxu3 %vm142_vm6, %v202_v45 }
 0x44f   :  { %441 = vmatpush.msra.mxu3 %v81_v21  ;;  %v543_v21 = vld [vmem:[#allocation3 + $0x18] sm:$0xff] }
 0x450   :  { %574 = vmatpush.msra.mxu1 %v543_v21 }
 0x451   :  { %442 = vmatpush.msra.mxu3 %v80_v22  ;;  %v542_v22 = vld [vmem:[#allocation3 + $0x10] sm:$0xff] }
 0x452   :  { %575 = vmatpush.msra.mxu1 %v542_v22 }
 0x453   :  { %443 = vmatpush.msra.mxu3 %v79_v24  ;;  %v540_v24 = vld [vmem:[#allocation3] sm:$0xff] }
 0x454   :  { %576 = vmatpush.msra.mxu1 %v541_v23 }
 0x455   :  { %444 = vmatpush.msra.mxu3 %v78_v25 }
 0x456   :  { %577 = vmatpush.msra.mxu1 %v540_v24 }
 0x4d1   :  { %v222_v46 = vpop.f32.mrf.mxu3 }
 0x4d2   :  { %v226_v47 = vrot.slane %v222_v46, 4 }
 0x4d4   :  { %v228_v48 = vadd.f32 %v226_v47, %v1273_v9 }
 0x4d6   :  { %1085 = vtanh.f32 %v228_v48 }
 0x4dc   :  { %v1086_v49 = vpop.eup %1085 }
 0x4dd   :  { %v230_v50 = vmul.f32 %v1086_v49, %v1269_v6 }
 0x4df   :  { %v231_v51 = vadd.f32 %v230_v50, %v1276_v11 }
 0x4e1   :  { %237 = vrot.lane.b32.xlu2 %v231_v51, %s1198_s1  ;;  %v235_v55 = vmul.f32 %v233_v54, %v231_v51 }
 0x53b   :  { %v238_v52 = vpop.permute.xlu2 %237 }
 0x53c   :  { %v240_v53 = vmul.f32 %v238_v52, %v231_v51 }
 0x53e   :  { %242 = vrot.lane.b32.xlu0 %v240_v53, %s1199_s3 }
 0x5b0   :  { %v243_v56 = vpop.permute.xlu0 %242 }
 0x5b1   :  { %v245_v57 = vadd.f32 %v243_v56, %v235_v55 }
 0x5b3   :  { %1087 = vtanh.f32 %v245_v57  ;;  %v291_v10 = vrot.slane %v245_v57, 6  ;;  %v547_v57 = vld [vmem:[#allocation5 + $0x18] sm:$0xff] }
 0x5b9   :  { %v1088_v58 = vpop.eup %1087 }
 0x5ba   :  { %248 = vrot.lane.b32.xlu1 %v1088_v58, %s1198_s1  ;;  %v1371_v58 = vmul.f32 %v547_v57, %v1269_v6 }
 0x5bc   :  { %620 = vmatpush.msrb.mxu2 %v1371_v58  ;;  %736 = vmatpush.msra.mxu0 %v1371_v58 }
 0x62c   :  { %v249_v59 = vpop.permute.xlu1 %248 }
 0x62d   :  { %v251_v60 = vmul.f32 %v249_v59, %v231_v51  ;;  %v546_v59 = vld [vmem:[#allocation5 + $0x10] sm:$0xff] }
 0x62f   :  { %v258_v61 = vrot.slane %v251_v60, 4 }
 0x631   :  { %259 = vrot.lane.b32.xlu2 %v258_v61, %s1199_s3  ;;  %v544_v61 = vld [vmem:[#allocation5] sm:$0xff] }
 0x68b   :  { %v260_v62 = vpop.permute.xlu2 %259 }
 0x68c   :  { %1050 = vmatmul.msk.f32.vlgmr.msrb.gmra.mxu3 %vm142_vm6, %v260_v62  ;;  %v1375_v62 = vmul.f32 %v546_v59, %v1269_v6 }
 0x68d   :  { %679 = vmatpush.msrb.mxu3 %v1371_v58 }
 0x68e   :  { %621 = vmatpush.msrb.mxu2 %v1375_v62  ;;  %737 = vmatpush.msra.mxu0 %v1375_v62 }
 0x68f   :  { %680 = vmatpush.msrb.mxu3 %v1375_v62 }
 0x70f   :  { %v280_v63 = vpop.f32.mrf.mxu3 }
 0x710   :  { %v284_v0 = vrot.slane %v280_v63, 2 }
 0x712   :  { %v286_v1 = vadd.f32 %v284_v0, %v1273_v9  ;;  %v1385_v0 = vmul.f32 %v544_v61, %v1269_v6 }
 0x714   :  { %1089 = vtanh.f32 %v286_v1 }
 0x71a   :  { %v1090_v2 = vpop.eup %1089 }
 0x71b   :  { %v288_v3 = vmul.f32 %v1090_v2, %v1269_v6 }
 0x71d   :  { %v289_v5 = vadd.f32 %v288_v3, %v1276_v11 }
 0x71f   :  { %295 = vrot.lane.b32.xlu0 %v289_v5, %s1198_s1  ;;  %v293_v12 = vmul.f32 %v291_v10, %v289_v5 }
 0x791   :  { %v296_v7 = vpop.permute.xlu0 %295 }
 0x792   :  { %v298_v8 = vmul.f32 %v296_v7, %v289_v5 }
 0x794   :  { %300 = vrot.lane.b32.xlu1 %v298_v8, %s1199_s3 }
 0x79c   :  { %195 = vrot.lane.b32.xlu1 %v193_v43, %s1199_s3 }
 0x806   :  { %v301_v13 = vpop.permute.xlu1 %300 }
 0x807   :  { %v303_v14 = vadd.f32 %v301_v13, %v293_v12 }
 0x809   :  { %1091 = vtanh.f32 %v303_v14  ;;  %v346_v47 = vrot.slane %v303_v14, 6 }
 0x80e   :  { %v196_v9 = vpop.permute.xlu1 %195 }
 0x80f   :  { %v1092_v15 = vpop.eup %1091  ;;  %199 = vst.msk [vmem:[#allocation2] sm:$0xc] %vm198_vm7, %v196_v9 }
 0x810   :  { %306 = vrot.lane.b32.xlu2 %v1092_v15, %s1198_s1 }
 0x818   :  { %253 = vrot.lane.b32.xlu2 %v251_v60, %s1199_s3  ;;  %v545_v60 = vld [vmem:[#allocation5 + $0x8] sm:$0xff] }
 0x819   :  { %v1378_v63 = vmul.f32 %v545_v60, %v1269_v6 }
 0x81b   :  { %622 = vmatpush.msrb.mxu2 %v1378_v63  ;;  %681 = vmatpush.msrb.mxu3 %v1378_v63 }
 0x81c   :  { %738 = vmatpush.msra.mxu0 %v1378_v63 }
 0x81d   :  { %623 = vmatpush.msrb.mxu2 %v1385_v0  ;;  %682 = vmatpush.msrb.mxu3 %v1385_v0 }
 0x81e   :  { %739 = vmatpush.msra.mxu0 %v1385_v0 }
 0x86a   :  { %v307_v17 = vpop.permute.xlu2 %306 }
 0x86b   :  { %v309_v18 = vmul.f32 %v307_v17, %v289_v5 }
 0x86d   :  { %v316_v19 = vrot.slane %v309_v18, 6 }
 0x86f   :  { %317 = vrot.lane.b32.xlu0 %v316_v19, %s1199_s3 }
 0x872   :  { %v254_v20 = vpop.permute.xlu2 %253 }
 0x873   :  { %257 = vst.msk [vmem:[#allocation2] sm:$0x30] %vm256_vm8, %v254_v20 }
 0x877   :  { %311 = vrot.lane.b32.xlu0 %v309_v18, %s1199_s3 }
 0x8e1   :  { %v318_v25 = vpop.permute.xlu0 %317 }
 0x8e2   :  { %1051 = vmatmul.msk.f32.vlgmr.msrb.gmra.mxu1 %vm142_vm6, %v318_v25 }
 0x8e3   :  { %958 = vmatpush.msrb.mxu1 %v1371_v58 }
 0x8e5   :  { %959 = vmatpush.msrb.mxu1 %v1375_v62 }
 0x8e7   :  { %960 = vmatpush.msrb.mxu1 %v1378_v63 }
 0x8e9   :  { %v312_v26 = vpop.permute.xlu0 %311  ;;  %961 = vmatpush.msrb.mxu1 %v1385_v0 }
 0x8ea   :  { %315 = vst.msk [vmem:[#allocation2] sm:$0xc0] %vm314_vm9, %v312_v26 }
 0x8f1   :  { %v538_v27 = vld [vmem:[#allocation2] sm:$0xff] }
 0x8f2   :  { %1055 = vmatmul.msk.f32.vlgmr.msra.gmra.mxu1 %vm142_vm6, %v538_v27 }
 0x95f   :  { %v338_v31 = vpop.f32.mrf.mxu1 }
 0x960   :  { %v341_v32 = vadd.f32 %v338_v31, %v1339_v30 }
 0x962   :  { %1093 = vtanh.f32 %v341_v32 }
 0x968   :  { %v1094_v33 = vpop.eup %1093 }
 0x969   :  { %v343_v34 = vmul.f32 %v1094_v33, %v1269_v6 }
 0x96b   :  { %v344_v35 = vadd.f32 %v343_v34, %v1276_v11 }
 0x96d   :  { %350 = vrot.lane.b32.xlu1 %v344_v35, %s1198_s1  ;;  %v348_v48 = vmul.f32 %v346_v47, %v344_v35 }
 0x96f   :  { %v579_v4 = vpop.f32.mrf.mxu1 }
 0x970   :  { %v580_v37 = vadd.f32 %v1347_v36, %v579_v4 }
 0x972   :  { %v1352_v38 = vmul.f32 %v580_v37, %v1269_v6 }
 0x974   :  { %1095 = vtanh.f32 %v1352_v38 }
 0x97a   :  { %v1096_v39 = vpop.eup %1095 }
 0x97b   :  { %v588_v40 = vmul.f32 %v1096_v39, %v1269_v6 }
 0x97d   :  { %v589_v41 = vadd.f32 %v588_v40, %v1276_v11 }
 0x97f   :  { %591 = vrot.lane.b32.xlu0 %v589_v41, %s1198_s1 }
 0x9df   :  { %v351_v42 = vpop.permute.xlu1 %350 }
 0x9e0   :  { %v353_v43 = vmul.f32 %v351_v42, %v344_v35 }
 0x9e2   :  { %355 = vrot.lane.b32.xlu2 %v353_v43, %s1199_s3 }
 0x9f1   :  { %v592_v44 = vpop.permute.xlu0 %591 }
 0x9f2   :  { %v1359_v45 = vmul.f32 %v592_v44, %v589_v41 }
 0x9f4   :  { %1097 = vtanh.f32 %v1359_v45  ;;  %v636_v16 = vrot.slane %v1359_v45, 6 }
 0x9fa   :  { %v1098_v46 = vpop.eup %1097 }
 0x9fb   :  { %597 = vrot.lane.b32.xlu2 %v1098_v46, %s1200_s25 }
 0xa3c   :  { %v356_v49 = vpop.permute.xlu2 %355 }
 0xa3d   :  { %v1363_v50 = vadd.f32 %v356_v49, %v348_v48 }
 0xa3f   :  { %1099 = vtanh.f32 %v1363_v50  ;;  %v400_v22 = vrot.slane %v1363_v50, 6 }
 0xa45   :  { %v1100_v51 = vpop.eup %1099 }
 0xa46   :  { %361 = vrot.lane.b32.xlu1 %v1100_v51, %s1198_s1 }
 0xa55   :  { %v598_v52 = vpop.permute.xlu2 %597 }
 0xa56   :  { %v600_v53 = vmul.f32 %v598_v52, %v589_v41 }
 0xa58   :  { %602 = vrot.lane.b32.xlu1 %v600_v53, %s1199_s3 }
 0xab8   :  { %v362_v54 = vpop.permute.xlu1 %361 }
 0xab9   :  { %v364_v55 = vmul.f32 %v362_v54, %v344_v35 }
 0xabb   :  { %366 = vrot.lane.b32.xlu0 %v364_v55, %s1199_s3 }
 0xaca   :  { %v603_v56 = vpop.permute.xlu1 %602 }
 0xacb   :  { %605 = vst.msk [vmem:[#allocation2] sm:$0x3] %vm140_vm5, %v603_v56 }
 0xb2d   :  { %v367_v1 = vpop.permute.xlu0 %366 }
 0xb2e   :  { %369 = vst.msk [vmem:[#allocation2 + $0x8] sm:$0x3] %vm140_vm5, %v367_v1  ;;  %1052 = vmatmul.msk.f32.vlgmr.msra.gmra.mxu2 %vm142_vm6, %v367_v1 }
 0xb2f   :  { %793 = vmatpush.msra.mxu2 %v1371_v58 }
 0xb31   :  { %794 = vmatpush.msra.mxu2 %v1375_v62 }
 0xb33   :  { %795 = vmatpush.msra.mxu2 %v1378_v63 }
 0xb35   :  { %796 = vmatpush.msra.mxu2 %v1385_v0 }
 0xb36   :  { %1057 = vmatmul.msk.f32.vlgmr.msrb.gmra.mxu2 %vm142_vm6, %v603_v56 }
 0xbb1   :  { %v389_v2 = vpop.f32.mrf.mxu2 }
 0xbb2   :  { %v393_v3 = vrot.slane %v389_v2, 6 }
 0xbb4   :  { %v395_v5 = vadd.f32 %v393_v3, %v1339_v30 }
 0xbb6   :  { %1101 = vtanh.f32 %v395_v5 }
 0xbb9   :  { %v625_v7 = vpop.f32.mrf.mxu2 }
 0xbba   :  { %v629_v8 = vrot.slane %v625_v7, 6 }
 0xbbc   :  { %v1102_v10 = vpop.eup %1101  ;;  %v631_v12 = vadd.f32 %v629_v8, %v1352_v38 }
 0xbbd   :  { %v397_v13 = vmul.f32 %v1102_v10, %v1269_v6 }
 0xbbe   :  { %1103 = vtanh.f32 %v631_v12 }
 0xbbf   :  { %v398_v14 = vadd.f32 %v397_v13, %v1276_v11 }
 0xbc1   :  { %404 = vrot.lane.b32.xlu2 %v398_v14, %s1198_s1  ;;  %v402_v23 = vmul.f32 %v400_v22, %v398_v14 }
 0xbc4   :  { %v1104_v9 = vpop.eup %1103 }
 0xbc5   :  { %v633_v15 = vmul.f32 %v1104_v9, %v1269_v6 }
 0xbc7   :  { %v634_v17 = vadd.f32 %v633_v15, %v1276_v11 }
 0xbc9   :  { %642 = vrot.lane.b32.xlu0 %v634_v17, %s1198_s1  ;;  %637 = vrot.lane.b32.xlu2 %v636_v16, %s1199_s3 }
 0xc1b   :  { %v405_v18 = vpop.permute.xlu2 %404 }
 0xc1c   :  { %v407_v19 = vmul.f32 %v405_v18, %v398_v14 }
 0xc1e   :  { %409 = vrot.lane.b32.xlu1 %v407_v19, %s1199_s3 }
 0xc23   :  { %v638_v27 = vpop.permute.xlu2 %637 }
 0xc24   :  { %v640_v28 = vmul.f32 %v638_v27, %v634_v17 }
 0xc3b   :  { %v643_v20 = vpop.permute.xlu0 %642 }
 0xc3c   :  { %v645_v21 = vmul.f32 %v643_v20, %v634_v17 }
 0xc3e   :  { %647 = vrot.lane.b32.xlu0 %v645_v21, %s1199_s3 }
 0xc90   :  { %v410_v24 = vpop.permute.xlu1 %409 }
 0xc91   :  { %v412_v25 = vadd.f32 %v410_v24, %v402_v23 }
 0xc93   :  { %1105 = vtanh.f32 %v412_v25  ;;  %v457_v59 = vrot.slane %v412_v25, 6 }
 0xc99   :  { %v1106_v26 = vpop.eup %1105 }
 0xc9a   :  { %415 = vrot.lane.b32.xlu1 %v1106_v26, %s1198_s1 }
 0xcb0   :  { %v648_v29 = vpop.permute.xlu0 %647 }
 0xcb1   :  { %v650_v31 = vadd.f32 %v648_v29, %v640_v28 }
 0xcb3   :  { %1107 = vtanh.f32 %v650_v31  ;;  %v695_v2 = vrot.slane %v650_v31, 6 }
 0xcb9   :  { %v1108_v32 = vpop.eup %1107 }
 0xcba   :  { %653 = vrot.lane.b32.xlu2 %v1108_v32, %s1198_s1 }
 0xd0c   :  { %v416_v33 = vpop.permute.xlu1 %415 }
 0xd0d   :  { %v1420_v34 = vmul.f32 %v416_v33, %v398_v14 }
 0xd0f   :  { %v424_v35 = vrot.slane %v1420_v34, 2 }
 0xd11   :  { %425 = vrot.lane.b32.xlu0 %v424_v35, %s1199_s3 }
 0xd14   :  { %v654_v4 = vpop.permute.xlu2 %653 }
 0xd15   :  { %v1424_v37 = vmul.f32 %v654_v4, %v634_v17 }
 0xd17   :  { %v662_v39 = vrot.slane %v1424_v37, 2 }
 0xd19   :  { %663 = vrot.lane.b32.xlu1 %v662_v39, %s1199_s3 }
 0xd83   :  { %v426_v40 = vpop.permute.xlu0 %425 }
 0xd84   :  { %1053 = vmatmul.msk.f32.vlgmr.msra.gmra.mxu3 %vm142_vm6, %v426_v40 }
 0xd85   :  { %844 = vmatpush.msra.mxu3 %v1371_v58 }
 0xd87   :  { %845 = vmatpush.msra.mxu3 %v1375_v62 }
 0xd89   :  { %846 = vmatpush.msra.mxu3 %v1378_v63 }
 0xd8b   :  { %v664_v41 = vpop.permute.xlu1 %663  ;;  %847 = vmatpush.msra.mxu3 %v1385_v0 }
 0xd8c   :  { %1058 = vmatmul.msk.f32.vlgmr.msrb.gmra.mxu3 %vm142_vm6, %v664_v41 }
 0xe07   :  { %v446_v42 = vpop.f32.mrf.mxu3 }
 0xe08   :  { %v450_v43 = vrot.slane %v446_v42, 4 }
 0xe0a   :  { %v452_v44 = vadd.f32 %v450_v43, %v1339_v30 }
 0xe0c   :  { %1109 = vtanh.f32 %v452_v44 }
 0xe0f   :  { %v684_v45 = vpop.f32.mrf.mxu3 }
 0xe10   :  { %v688_v46 = vrot.slane %v684_v45, 4 }
 0xe12   :  { %v1110_v47 = vpop.eup %1109  ;;  %v690_v48 = vadd.f32 %v688_v46, %v1352_v38 }
 0xe13   :  { %v454_v49 = vmul.f32 %v1110_v47, %v1269_v6 }
 0xe14   :  { %1111 = vtanh.f32 %v690_v48 }
 0xe15   :  { %v455_v50 = vadd.f32 %v454_v49, %v1276_v11 }
 0xe17   :  { %461 = vrot.lane.b32.xlu2 %v455_v50, %s1198_s1  ;;  %v459_v60 = vmul.f32 %v457_v59, %v455_v50 }
 0xe1a   :  { %v1112_v51 = vpop.eup %1111 }
 0xe1b   :  { %v692_v52 = vmul.f32 %v1112_v51, %v1269_v6 }
 0xe1d   :  { %v693_v53 = vadd.f32 %v692_v52, %v1276_v11 }
 0xe1f   :  { %699 = vrot.lane.b32.xlu0 %v693_v53, %s1198_s1  ;;  %v697_v3 = vmul.f32 %v695_v2, %v693_v53 }
 0xe71   :  { %v462_v54 = vpop.permute.xlu2 %461 }
 0xe72   :  { %v464_v55 = vmul.f32 %v462_v54, %v455_v50 }
 0xe74   :  { %466 = vrot.lane.b32.xlu1 %v464_v55, %s1199_s3 }
 0xe91   :  { %v700_v56 = vpop.permute.xlu0 %699 }
 0xe92   :  { %v702_v57 = vmul.f32 %v700_v56, %v693_v53 }
 0xe94   :  { %704 = vrot.lane.b32.xlu2 %v702_v57, %s1199_s3 }
 0xee6   :  { %v467_v61 = vpop.permute.xlu1 %466 }
 0xee7   :  { %v469_v1 = vadd.f32 %v467_v61, %v459_v60 }
 0xee9   :  { %1113 = vtanh.f32 %v469_v1 }
 0xeee   :  { %v705_v5 = vpop.permute.xlu2 %704 }
 0xeef   :  { %v1114_v7 = vpop.eup %1113  ;;  %v707_v8 = vadd.f32 %v705_v5, %v697_v3 }
 0xef0   :  { %472 = vrot.lane.b32.xlu0 %v1114_v7, %s1198_s1 }
 0xef1   :  { %1115 = vtanh.f32 %v707_v8  ;;  %v752_v35 = vrot.slane %v707_v8, 6 }
 0xef7   :  { %v1116_v10 = vpop.eup %1115 }
 0xef8   :  { %710 = vrot.lane.b32.xlu1 %v1116_v10, %s1198_s1 }
 0xf62   :  { %v473_v12 = vpop.permute.xlu0 %472 }
 0xf63   :  { %v475_v13 = vmul.f32 %v473_v12, %v455_v50 }
 0xf65   :  { %v481_v14 = vrot.slane %v475_v13, 4 }
 0xf67   :  { %482 = vrot.lane.b32.xlu2 %v481_v14, %s1199_s3 }
 0xf6a   :  { %v711_v9 = vpop.permute.xlu1 %710 }
 0xf6b   :  { %v1447_v15 = vmul.f32 %v711_v9, %v693_v53 }
 0xf6d   :  { %v719_v16 = vrot.slane %v1447_v15, 4 }
 0xf6f   :  { %720 = vrot.lane.b32.xlu0 %v719_v16, %s1199_s3 }
 0xfc1   :  { %v483_v17 = vpop.permute.xlu2 %482 }
 0xfc2   :  { %1054 = vmatmul.msk.f32.vlgmr.msrb.gmra.mxu0 %vm142_vm6, %v483_v17 }
 0xfc3   :  { %901 = vmatpush.msrb.mxu0 %v1371_v58 }
 0xfc5   :  { %902 = vmatpush.msrb.mxu0 %v1375_v62 }
 0xfc7   :  { %903 = vmatpush.msrb.mxu0 %v1378_v63 }
 0xfc9   :  { %904 = vmatpush.msrb.mxu0 %v1385_v0 }
 0xfe1   :  { %v721_v18 = vpop.permute.xlu0 %720 }
 0xfe2   :  { %1059 = vmatmul.msk.f32.vlgmr.msra.gmra.mxu0 %vm142_vm6, %v721_v18 }
0x103f   :  { %v503_v19 = vpop.f32.mrf.mxu0 }
0x1040   :  { %v507_v20 = vrot.slane %v503_v19, 2 }
0x1042   :  { %v509_v21 = vadd.f32 %v507_v20, %v1339_v30 }
0x1044   :  { %1117 = vtanh.f32 %v509_v21 }
0x104a   :  { %v1118_v22 = vpop.eup %1117 }
0x104b   :  { %v511_v23 = vmul.f32 %v1118_v22, %v1269_v6 }
0x104d   :  { %v512_v24 = vadd.f32 %v511_v23, %v1276_v11 }
0x104f   :  { %518 = vrot.lane.b32.xlu1 %v512_v24, %s1198_s1 }
0x105f   :  { %v741_v58 = vpop.f32.mrf.mxu0 }
0x1060   :  { %v745_v62 = vrot.slane %v741_v58, 2 }
0x1062   :  { %v747_v63 = vadd.f32 %v745_v62, %v1352_v38  ;;  %v514_v38 = vrot.slane %v469_v1, 6 }
0x1064   :  { %1119 = vtanh.f32 %v747_v63  ;;  %v516_v31 = vmul.f32 %v514_v38, %v512_v24 }
0x106a   :  { %v1120_v0 = vpop.eup %1119 }
0x106b   :  { %v749_v25 = vmul.f32 %v1120_v0, %v1269_v6 }
0x106d   :  { %v750_v26 = vadd.f32 %v749_v25, %v1276_v11 }
0x106f   :  { %756 = vrot.lane.b32.xlu2 %v750_v26, %s1198_s1  ;;  %v754_v4 = vmul.f32 %v752_v35, %v750_v26 }
0x10c1   :  { %v519_v30 = vpop.permute.xlu1 %518 }
0x10c2   :  { %v521_v27 = vmul.f32 %v519_v30, %v512_v24 }
0x10c4   :  { %523 = vrot.lane.b32.xlu0 %v521_v27, %s1199_s3 }
0x10c9   :  { %v757_v28 = vpop.permute.xlu2 %756 }
0x10ca   :  { %v759_v29 = vmul.f32 %v757_v28, %v750_v26 }
0x10cc   :  { %761 = vrot.lane.b32.xlu1 %v759_v29, %s1199_s3 }
0x10d4   :  { %420 = vrot.lane.b32.xlu1 %v1420_v34, %s1199_s3 }
0x1136   :  { %v524_v32 = vpop.permute.xlu0 %523 }
0x1137   :  { %v526_v33 = vadd.f32 %v524_v32, %v516_v31 }
0x1139   :  { %1121 = vtanh.f32 %v526_v33 }
0x113e   :  { %v762_v39 = vpop.permute.xlu1 %761 }
0x113f   :  { %v1122_v40 = vpop.eup %1121  ;;  %v764_v41 = vadd.f32 %v762_v39, %v754_v4 }
0x1140   :  { %529 = vrot.lane.b32.xlu2 %v1122_v40, %s1198_s1 }
0x1141   :  { %1123 = vtanh.f32 %v764_v41  ;;  %v806_v2 = vrot.slane %v764_v41, 6 }
0x1146   :  { %v421_v42 = vpop.permute.xlu1 %420 }
0x1147   :  { %v1124_v43 = vpop.eup %1123  ;;  %423 = vst.msk [vmem:[#allocation2 + $0x8] sm:$0xc] %vm198_vm7, %v421_v42 }
0x1148   :  { %477 = vrot.lane.b32.xlu2 %v475_v13, %s1199_s3  ;;  %767 = vrot.lane.b32.xlu0 %v1124_v43, %s1198_s1 }
0x119a   :  { %v530_v34 = vpop.permute.xlu2 %529 }
0x119b   :  { %v532_v44 = vmul.f32 %v530_v34, %v512_v24 }
0x119d   :  { %534 = vrot.lane.b32.xlu0 %v532_v44, %s1199_s3 }
0x11a2   :  { %v478_v45 = vpop.permute.xlu2 %477 }
0x11a3   :  { %480 = vst.msk [vmem:[#allocation2 + $0x8] sm:$0x30] %vm256_vm8, %v478_v45 }
0x11ba   :  { %v768_v46 = vpop.permute.xlu0 %767 }
0x11bb   :  { %v1475_v47 = vmul.f32 %v768_v46, %v750_v26 }
0x11bd   :  { %v776_v48 = vrot.slane %v1475_v47, 6 }
0x11bf   :  { %777 = vrot.lane.b32.xlu1 %v776_v48, %s1199_s3 }
0x120f   :  { %v535_v49 = vpop.permute.xlu0 %534 }
0x1210   :  { %537 = vst.msk [vmem:[#allocation2 + $0x8] sm:$0xc0] %vm314_vm9, %v535_v49 }
0x1217   :  { %v539_v50 = vld [vmem:[#allocation2 + $0x8] sm:$0xff] }
0x1218   :  { %1056 = vmatmul.msk.f32.gmra.mxu1 %vm142_vm6, %v539_v50 }
0x1231   :  { %v778_v51 = vpop.permute.xlu1 %777 }
0x1232   :  { %1060 = vmatmul.msk.f32.vlgmr.msra.gmra.mxu2 %vm142_vm6, %v778_v51 }
0x1295   :  { %v582_v52 = vpop.f32.mrf.mxu1 }
0x1296   :  { %v583_v53 = vadd.f32 %v1347_v36, %v582_v52 }
0x1298   :  { %v1484_v54 = vmul.f32 %v583_v53, %v1269_v6 }
0x12b5   :  { %v798_v55 = vpop.f32.mrf.mxu2 }
0x12b6   :  { %v801_v56 = vadd.f32 %v798_v55, %v1484_v54 }
0x12b8   :  { %1125 = vtanh.f32 %v801_v56 }
0x12be   :  { %v1126_v57 = vpop.eup %1125 }
0x12bf   :  { %v803_v59 = vmul.f32 %v1126_v57, %v1269_v6 }
0x12c1   :  { %v804_v60 = vadd.f32 %v803_v59, %v1276_v11 }
0x12c3   :  { %810 = vrot.lane.b32.xlu2 %v804_v60, %s1198_s1  ;;  %v808_v36 = vmul.f32 %v806_v2, %v804_v60 }
0x131d   :  { %v811_v61 = vpop.permute.xlu2 %810 }
0x131e   :  { %v813_v1 = vmul.f32 %v811_v61, %v804_v60  ;;  %v1001_v61 = vld [vmem:[%s1564_s7 + $0x8] sm:$0xff] }
0x1320   :  { %815 = vrot.lane.b32.xlu0 %v813_v1, %s1199_s3  ;;  %v1000_v1 = vld [vmem:[%s1564_s7] sm:$0xff] }
0x1392   :  { %v816_v3 = vpop.permute.xlu0 %815 }
0x1393   :  { %v818_v5 = vadd.f32 %v816_v3, %v808_v36 }
0x1395   :  { %1127 = vtanh.f32 %v818_v5  ;;  %v860_v21 = vrot.slane %v818_v5, 6 }
0x139b   :  { %v1128_v7 = vpop.eup %1127 }
0x139c   :  { %821 = vrot.lane.b32.xlu1 %v1128_v7, %s1198_s1 }
0x140e   :  { %v822_v8 = vpop.permute.xlu1 %821 }
0x140f   :  { %v824_v10 = vmul.f32 %v822_v8, %v804_v60  ;;  %v1002_v60 = vld [vmem:[%s1564_s7 + $0x10] sm:$0xff]  ;;  %v1076_v8 = vld [vmem:[%s1565_s8] ss:$0 sm:$0xff] }
0x1411   :  { %826 = vrot.lane.b32.xlu2 %v824_v10, %s1199_s3 }
0x146b   :  { %v827_v12 = vpop.permute.xlu2 %826 }
0x146c   :  { %829 = vst.msk [vmem:[#allocation2 + $0x8] sm:$0x3] %vm140_vm5, %v827_v12  ;;  %1061 = vmatmul.msk.f32.vlgmr.msra.gmra.mxu3 %vm142_vm6, %v827_v12 }
0x14ef   :  { %v849_v13 = vpop.f32.mrf.mxu3 }
0x14f0   :  { %v853_v14 = vrot.slane %v849_v13, 6 }
0x14f2   :  { %v855_v9 = vadd.f32 %v853_v14, %v1484_v54 }
0x14f4   :  { %1129 = vtanh.f32 %v855_v9 }
0x14fa   :  { %v1130_v16 = vpop.eup %1129 }
0x14fb   :  { %v857_v17 = vmul.f32 %v1130_v16, %v1269_v6 }
0x14fd   :  { %v858_v18 = vadd.f32 %v857_v17, %v1276_v11 }
0x14ff   :  { %864 = vrot.lane.b32.xlu0 %v858_v18, %s1198_s1  ;;  %v862_v22 = vmul.f32 %v860_v21, %v858_v18 }
0x1571   :  { %v865_v19 = vpop.permute.xlu0 %864 }
0x1572   :  { %v867_v20 = vmul.f32 %v865_v19, %v858_v18 }
0x1574   :  { %869 = vrot.lane.b32.xlu1 %v867_v20, %s1199_s3 }
0x15e6   :  { %v870_v23 = vpop.permute.xlu1 %869 }
0x15e7   :  { %v872_v24 = vadd.f32 %v870_v23, %v862_v22 }
0x15e9   :  { %1131 = vtanh.f32 %v872_v24  ;;  %v917_v33 = vrot.slane %v872_v24, 6 }
0x15ef   :  { %v1132_v58 = vpop.eup %1131 }
0x15f0   :  { %875 = vrot.lane.b32.xlu2 %v1132_v58, %s1198_s1 }
0x164a   :  { %v876_v62 = vpop.permute.xlu2 %875 }
0x164b   :  { %v878_v63 = vmul.f32 %v876_v62, %v858_v18 }
0x164d   :  { %v884_v0 = vrot.slane %v878_v63, 2 }
0x164f   :  { %885 = vrot.lane.b32.xlu0 %v884_v0, %s1199_s3 }
0x16c1   :  { %v886_v25 = vpop.permute.xlu0 %885 }
0x16c2   :  { %1062 = vmatmul.msk.f32.vlgmr.msrb.gmra.mxu0 %vm142_vm6, %v886_v25 }
0x173f   :  { %v906_v26 = vpop.f32.mrf.mxu0 }
0x1740   :  { %v910_v30 = vrot.slane %v906_v26, 4 }
0x1742   :  { %v912_v27 = vadd.f32 %v910_v30, %v1484_v54 }
0x1744   :  { %1133 = vtanh.f32 %v912_v27 }
0x174a   :  { %v1134_v28 = vpop.eup %1133 }
0x174b   :  { %v914_v29 = vmul.f32 %v1134_v28, %v1269_v6 }
0x174d   :  { %v915_v38 = vadd.f32 %v914_v29, %v1276_v11 }
0x174f   :  { %921 = vrot.lane.b32.xlu1 %v915_v38, %s1198_s1  ;;  %v919_v35 = vmul.f32 %v917_v33, %v915_v38 }
0x17c1   :  { %v922_v31 = vpop.permute.xlu1 %921 }
0x17c2   :  { %v924_v32 = vmul.f32 %v922_v31, %v915_v38 }
0x17c4   :  { %926 = vrot.lane.b32.xlu2 %v924_v32, %s1199_s3 }
0x181e   :  { %v927_v4 = vpop.permute.xlu2 %926 }
0x181f   :  { %v929_v39 = vadd.f32 %v927_v4, %v919_v35 }
0x1821   :  { %1135 = vtanh.f32 %v929_v39 }
0x1827   :  { %v1136_v40 = vpop.eup %1135 }
0x1828   :  { %932 = vrot.lane.b32.xlu0 %v1136_v40, %s1198_s1 }
0x189a   :  { %v933_v41 = vpop.permute.xlu0 %932 }
0x189b   :  { %v935_v42 = vmul.f32 %v933_v41, %v915_v38 }
0x189d   :  { %v941_v43 = vrot.slane %v935_v42, 4 }
0x189f   :  { %942 = vrot.lane.b32.xlu1 %v941_v43, %s1199_s3 }
0x1911   :  { %v943_v34 = vpop.permute.xlu1 %942 }
0x1912   :  { %1063 = vmatmul.msk.f32.vlgmr.msrb.gmra.mxu1 %vm142_vm6, %v943_v34 }
0x198f   :  { %v963_v44 = vpop.f32.mrf.mxu1 }
0x1990   :  { %v967_v45 = vrot.slane %v963_v44, 2 }
0x1992   :  { %v969_v46 = vadd.f32 %v967_v45, %v1484_v54 }
0x1994   :  { %1137 = vtanh.f32 %v969_v46 }
0x199a   :  { %v1138_v48 = vpop.eup %1137 }
0x199b   :  { %v971_v49 = vmul.f32 %v1138_v48, %v1269_v6 }
0x199d   :  { %v972_v50 = vadd.f32 %v971_v49, %v1276_v11  ;;  %v974_v11 = vrot.slane %v929_v39, 6 }
0x199f   :  { %978 = vrot.lane.b32.xlu2 %v972_v50, %s1198_s1  ;;  %v976_v54 = vmul.f32 %v974_v11, %v972_v50 }
0x19a7   :  { %658 = vrot.lane.b32.xlu2 %v1424_v37, %s1199_s3 }
0x19af   :  { %880 = vrot.lane.b32.xlu2 %v878_v63, %s1199_s3 }
0x19f9   :  { %v979_v51 = vpop.permute.xlu2 %978 }
0x19fa   :  { %v981_v52 = vmul.f32 %v979_v51, %v972_v50 }
0x19fc   :  { %983 = vrot.lane.b32.xlu0 %v981_v52, %s1199_s3 }
0x1a01   :  { %v659_v53 = vpop.permute.xlu2 %658 }
0x1a02   :  { %661 = vst.msk [vmem:[#allocation2] sm:$0xc] %vm198_vm7, %v659_v53 }
0x1a04   :  { %715 = vrot.lane.b32.xlu0 %v1447_v15, %s1199_s3  ;;  %v1003_v15 = vld [vmem:[%s1564_s7 + $0x18] sm:$0xff] }
0x1a05   :  { %1026 = vmatpush.msrb.mxu2 %v1003_v15 }
0x1a07   :  { %1027 = vmatpush.msrb.mxu2 %v1002_v60 }
0x1a09   :  { %v881_v6 = vpop.permute.xlu2 %880  ;;  %1028 = vmatpush.msrb.mxu2 %v1001_v61 }
0x1a0a   :  { %883 = vst.msk [vmem:[#allocation2 + $0x8] sm:$0xc] %vm198_vm7, %v881_v6 }
0x1a0b   :  { %1029 = vmatpush.msrb.mxu2 %v1000_v1 }
0x1a0c   :  { %937 = vrot.lane.b32.xlu0 %v935_v42, %s1199_s3 }
0x1a6e   :  { %v984_v37 = vpop.permute.xlu0 %983 }
0x1a6f   :  { %v986_v55 = vadd.f32 %v984_v37, %v976_v54 }
0x1a71   :  { %1139 = vtanh.f32 %v986_v55 }
0x1a76   :  { %v716_v56 = vpop.permute.xlu0 %715 }
0x1a77   :  { %v1140_v57 = vpop.eup %1139  ;;  %718 = vst.msk [vmem:[#allocation2] sm:$0x30] %vm256_vm8, %v716_v56 }
0x1a78   :  { %989 = vrot.lane.b32.xlu1 %v1140_v57, %s1198_s1 }
0x1a7e   :  { %v938_v59 = vpop.permute.xlu0 %937 }
0x1a7f   :  { %940 = vst.msk [vmem:[#allocation2 + $0x8] sm:$0x30] %vm256_vm8, %v938_v59 }
0x1a80   :  { %772 = vrot.lane.b32.xlu1 %v1475_v47, %s1199_s3 }
0x1aea   :  { %v990_v47 = vpop.permute.xlu1 %989 }
0x1aeb   :  { %v992_v2 = vmul.f32 %v990_v47, %v972_v50 }
0x1aed   :  { %994 = vrot.lane.b32.xlu1 %v992_v2, %s1199_s3 }
0x1af2   :  { %v773_v36 = vpop.permute.xlu1 %772 }
0x1af3   :  { %775 = vst.msk [vmem:[#allocation2] sm:$0xc0] %vm314_vm9, %v773_v36 }
0x1afa   :  { %v998_v3 = vld [vmem:[#allocation2] sm:$0xff] }
0x1afb   :  { %1064 = vmatmul.msk.f32.vlgmr.msrb.gmra.mxu2 %vm142_vm6, %v998_v3 }
0x1b5f   :  { %v995_v5 = vpop.permute.xlu1 %994 }
0x1b60   :  { %997 = vst.msk [vmem:[#allocation2 + $0x8] sm:$0xc0] %vm314_vm9, %v995_v5 }
0x1b67   :  { %v999_v7 = vld [vmem:[#allocation2 + $0x8] sm:$0xff] }
0x1b68   :  { %1065 = vmatmul.msk.f32.gmra.mxu2 %vm142_vm6, %v999_v7 }
0x1b7e   :  { %v1031_v10 = vpop.f32.mrf.mxu2 }
0x1b7f   :  { %v1032_v12 = vadd.f32 %v1076_v8, %v1031_v10 }
0x1b81   :  { %1037 = vst.msk [vmem:[%s1566_s9] sm:$0xff] %vm86_vm1, %v1032_v12 }
0x1beb   :  { %v1034_v13 = vpop.f32.mrf.mxu2 }
0x1bec   :  { %v1035_v14 = vadd.f32 %v1076_v8, %v1034_v13 }
0x1bee   :  { %1038 = vst.msk [vmem:[%s1566_s9 + $0x8] sm:$0xff] %vm86_vm1, %v1035_v14 }
0x1bef   :  { %1043 = vsyncpa [#allocation4], 1 }
0x1bf0   :  { %1044 = vsyncpa [#allocation6], 1 }

</bundles_post_ra>
